<compile_context>
chip_gen: v6e
topology: v6e:2x2x1
jax: 0.10.0
libtpu: 0.0.40
codegen_flags: <defaults>
</compile_context>

<pallas_src>
import functools

import jax
import jax.numpy as jnp
import numpy as np
from jax.experimental import pallas as pl
from jax.experimental.pallas import tpu as pltpu

# ---- "config" / "tokens" stand-ins (synthetic, deterministic) -------------
TOKENS = 16      # tokens.count()  -> input_dim == output_dim
HIDDEN = 32      # config.g_hidden_dim
LAYERS = 2       # config.g_layers
BATCH = 2
SEQ = 8

GATE_PITCH = 128          # each GRU gate gets its own 128-lane block


def _w_layout():
    """Static row offsets of each weight matrix inside the packed bf16 slab."""
    offs = []
    r = 0
    for l in range(LAYERS):
        d_l = TOKENS if l == 0 else HIDDEN
        offs.append((r, r + d_l))          # (wih_start, whh_start)
        r += d_l + HIDDEN
    lin_row = r
    r += HIDDEN
    total_rows = ((r + 15) // 16) * 16     # bf16 sublane-tile (16) alignment
    return tuple(offs), lin_row, total_rows


# ---------------------------------------------------------------------------
# One-time parameter packing (host-side, OUTSIDE the per-call path).
# ---------------------------------------------------------------------------
def prepare_params(params):
    """Pack all weights/biases into one bf16 weight slab + one f32 bias slab.

    * Each gate (r, z, n; PyTorch order) is lane-padded to its own 128-lane
      block so in-kernel gate slices are vreg-aligned.
    * b_ih + b_hh are pre-added for the r/z gates; b_hh_n is kept separate
      (it must sit under the r* multiply inside the recurrence).
    """
    GP = GATE_PITCH
    H, O, L = HIDDEN, TOKENS, LAYERS
    offs, lin_row, total_rows = _w_layout()

    def pad_gates(w):                      # (rows, 3H) -> (rows, 3*GP)
        rows = w.shape[0]
        out = np.zeros((rows, 3 * GP), np.float32)
        for g in range(3):
            out[:, g * GP:g * GP + H] = w[:, g * H:(g + 1) * H]
        return out

    w_slab = np.zeros((total_rows, 3 * GP), np.float32)
    n_brows = ((2 * L + 1 + 7) // 8) * 8
    b_slab = np.zeros((n_brows, 3 * GP), np.float32)

    for l in range(L):
        wih = np.asarray(params[f"wih_{l}"])          # (D_l, 3H)
        whh = np.asarray(params[f"whh_{l}"])          # (H, 3H)
        bih = np.asarray(params[f"bih_{l}"])[0]       # (3H,)
        bhh = np.asarray(params[f"bhh_{l}"])[0]       # (3H,)
        wih_r, whh_r = offs[l]
        w_slab[wih_r:wih_r + wih.shape[0]] = pad_gates(wih)
        w_slab[whh_r:whh_r + H] = pad_gates(whh)
        # combined bias: b_ih + b_hh for r/z, b_ih alone for n
        bc = np.concatenate([bih[:2 * H] + bhh[:2 * H], bih[2 * H:]])
        b_slab[l] = pad_gates(bc[None, :])[0]
        b_slab[L + l, :H] = bhh[2 * H:]               # b_hh_n

    w_slab[lin_row:lin_row + H, :O] = np.asarray(params["lin_w"])
    b_slab[2 * L, :O] = np.asarray(params["lin_b"])

    return (jnp.asarray(w_slab, jnp.bfloat16),
            jnp.asarray(b_slab, jnp.float32))


# ---------------------------------------------------------------------------
# Fused Policy kernel: GRU layers (unrolled over time) + Linear/ReLU/Softmax.
# Single invocation (no grid); all operands fully VMEM-resident (a few KB).
# ---------------------------------------------------------------------------
def _policy_fused_kernel(x_ref, h_ref, w_ref, b_ref, out_ref, hnew_ref, *,
                         layer_rows, lin_row):
    GP = GATE_PITCH
    L, B, H = h_ref.shape
    _, T, D = x_ref.shape
    O = out_ref.shape[-1]

    biases = b_ref[...]                               # (rows, 3*GP) f32 (tiny)

    # ---- Layer-0 input projection: ONE batched matmul, off the serial path.
    x2 = x_ref[...].reshape(B * T, D).astype(jnp.bfloat16)       # row = b*T + t
    wih0 = w_ref[layer_rows[0][0]:layer_rows[0][0] + D, :]       # (D, 3GP) bf16
    gi0 = jnp.dot(x2, wih0, preferred_element_type=jnp.float32) + biases[0:1, :]
    gi0 = gi0.reshape(B, T, 3 * GP)
    gi_seq = [gi0[:, t, :] for t in range(T)]         # (B, 3GP) each

    h_seq = None
    h = None
    for l in range(L):
        wih_r, whh_r = layer_rows[l]
        whh = w_ref[whh_r:whh_r + H, :]               # (H, 3GP) bf16
        bhn = biases[L + l:L + l + 1, 0:H]            # (1, H)   b_hh_n
        if l > 0:
            wih = w_ref[wih_r:wih_r + H, :]           # (H, 3GP) bf16
            bc = biases[l:l + 1, :]                   # (1, 3GP)

        h = h_ref[l].astype(jnp.float32)              # (B, H)
        last_layer = (l == L - 1)
        outs = []
        for t in range(T):                            # statically unrolled
            if l == 0:
                gi = gi_seq[t]                        # precomputed, off-chain
            else:
                # Depends only on layer-(l-1) step t -> wavefront-able with
                # this layer's serial h chain by the LLO scheduler.
                gi = jnp.dot(h_seq[t].astype(jnp.bfloat16), wih,
                             preferred_element_type=jnp.float32) + bc
            gh = jnp.dot(h.astype(jnp.bfloat16), whh,
                         preferred_element_type=jnp.float32)     # serial dep
            # Gate slices all start on 128-lane boundaries (no lane rotates).
            r = jax.nn.sigmoid(gi[:, 0:H] + gh[:, 0:H])
            z = jax.nn.sigmoid(gi[:, GP:GP + H] + gh[:, GP:GP + H])
            n = jnp.tanh(gi[:, 2 * GP:2 * GP + H]
                         + r * (gh[:, 2 * GP:2 * GP + H] + bhn))
            h = n + z * (h - n)                       # == (1 - z)*n + z*h
            if not last_layer:
                outs.append(h)                        # feed next layer (vregs)
        hnew_ref[l] = h.astype(hnew_ref.dtype)
        h_seq = outs

    # ---- Head on last layer's final hidden (== out[:, -1] in PyTorch).
    lin_w = w_ref[lin_row:lin_row + H, :]             # (H, 3GP) bf16; cols>=O are 0
    logits = jnp.dot(h.astype(jnp.bfloat16), lin_w,
                     preferred_element_type=jnp.float32)[:, 0:O]
    logits = logits + biases[2 * L:2 * L + 1, 0:O]
    act = jnp.maximum(logits, 0.0)                    # ReLU
    m = jnp.max(act, axis=-1, keepdims=True)
    e = jnp.exp(act - m)
    # Exact normalization (probs must sum to 1 for downstream sampling).
    out_ref[...] = (e / jnp.sum(e, axis=-1, keepdims=True)).astype(out_ref.dtype)


# ---------------------------------------------------------------------------
# Policy forward: one fused pallas_call, nothing else in the jitted graph.
# ---------------------------------------------------------------------------
@jax.jit
def policy_forward(prepared, x, h):
    """x: (B, T, input_dim) batch_first.  h: (layers, B, hidden_dim)."""
    w_slab, b_slab = prepared
    B, T, D = x.shape
    layer_rows, lin_row, _ = _w_layout()

    kernel = functools.partial(_policy_fused_kernel,
                               layer_rows=layer_rows, lin_row=lin_row)

    flops = 2 * (B * T * D * 3 * HIDDEN                      # layer-0 in-proj
                 + (LAYERS - 1) * B * T * HIDDEN * 3 * HIDDEN  # layer>0 in-proj
                 + LAYERS * B * T * HIDDEN * 3 * HIDDEN        # hh recurrence
                 + B * HIDDEN * TOKENS)                        # head
    transcendentals = LAYERS * B * T * 3 * HIDDEN + B * TOKENS
    bytes_accessed = (x.size * 4 + h.size * 4 + w_slab.size * 2
                      + b_slab.size * 4 + B * TOKENS * 4 + h.size * 4)

    vmem = pltpu.MemorySpace.VMEM
    out, h_new = pl.pallas_call(
        kernel,
        in_specs=[pl.BlockSpec(memory_space=vmem) for _ in range(4)],
        out_specs=(pl.BlockSpec(memory_space=vmem),
                   pl.BlockSpec(memory_space=vmem)),
        out_shape=(
            jax.ShapeDtypeStruct((B, TOKENS), jnp.float32),
            jax.ShapeDtypeStruct((LAYERS, B, HIDDEN), jnp.float32),
        ),
        cost_estimate=pl.CostEstimate(flops=int(flops),
                                      transcendentals=int(transcendentals),
                                      bytes_accessed=int(bytes_accessed)),
    )(x, h, w_slab, b_slab)
    return out, h_new


# ---------------------------------------------------------------------------
# Deterministic parameter init (PyTorch-style uniform(-1/sqrt(H), 1/sqrt(H)))
# ---------------------------------------------------------------------------
def init_params(key):
    params = {}
    bound = 1.0 / np.sqrt(HIDDEN)
    for l in range(LAYERS):
        d_in = TOKENS if l == 0 else HIDDEN
        key, k1, k2, k3, k4 = jax.random.split(key, 5)
        params[f"wih_{l}"] = jax.random.uniform(k1, (d_in, 3 * HIDDEN),
                                                jnp.float32, -bound, bound)
        params[f"whh_{l}"] = jax.random.uniform(k2, (HIDDEN, 3 * HIDDEN),
                                                jnp.float32, -bound, bound)
        params[f"bih_{l}"] = jax.random.uniform(k3, (1, 3 * HIDDEN),
                                                jnp.float32, -bound, bound)
        params[f"bhh_{l}"] = jax.random.uniform(k4, (1, 3 * HIDDEN),
                                                jnp.float32, -bound, bound)
    key, k1, k2 = jax.random.split(key, 3)
    params["lin_w"] = jax.random.uniform(k1, (HIDDEN, TOKENS),
                                         jnp.float32, -bound, bound)
    params["lin_b"] = jax.random.uniform(k2, (TOKENS,),
                                         jnp.float32, -bound, bound)
    return params


# ---------------------------------------------------------------------------
# Pure-JAX reference (f32 everywhere) for a correctness sanity check.
# ---------------------------------------------------------------------------
def reference_forward(params, x, h):
    B, T, _ = x.shape
    H = HIDDEN
    inp = x
    h_finals = []
    for l in range(LAYERS):
        wih, whh = params[f"wih_{l}"], params[f"whh_{l}"]
        bih, bhh = params[f"bih_{l}"][0], params[f"bhh_{l}"][0]
        ht = h[l]
        outs = []
        for t in range(T):
            xt = inp[:, t]
            gi = xt @ wih + bih
            gh = ht @ whh + bhh
            r = jax.nn.sigmoid(gi[:, :H] + gh[:, :H])
            z = jax.nn.sigmoid(gi[:, H:2 * H] + gh[:, H:2 * H])
            n = jnp.tanh(gi[:, 2 * H:] + r * gh[:, 2 * H:])
            ht = (1.0 - z) * n + z * ht
            outs.append(ht)
        inp = jnp.stack(outs, axis=1)
        h_finals.append(ht)
    last = inp[:, -1]
    logits = jnp.maximum(last @ params["lin_w"] + params["lin_b"], 0.0)
    out = jax.nn.softmax(logits, axis=1)
    return out, jnp.stack(h_finals, axis=0)


if __name__ == "__main__":
    key = jax.random.PRNGKey(0)
    key, kp, kx, kh = jax.random.split(key, 4)
    params = init_params(kp)
    prepared = prepare_params(params)        # one-time packing, off hot path

    x = jax.random.normal(kx, (BATCH, SEQ, TOKENS), jnp.float32)
    h0 = jax.random.normal(kh, (LAYERS, BATCH, HIDDEN), jnp.float32)

    out, h_new = policy_forward(prepared, x, h0)
    out, h_new = jax.block_until_ready((out, h_new))

    ref_out, ref_h = reference_forward(params, x, h0)
    # bf16 MXU operands -> looser tolerances vs. the f32 reference.
    np.testing.assert_allclose(np.asarray(out), np.asarray(ref_out),
                               rtol=2e-2, atol=2e-2)
    np.testing.assert_allclose(np.asarray(h_new), np.asarray(ref_h),
                               rtol=3e-2, atol=3e-2)
    # Softmax uses an exact divide -> sums to 1 to f32 rounding.
    np.testing.assert_allclose(np.asarray(out).sum(axis=1),
                               np.ones(BATCH), rtol=1e-5, atol=1e-5)

    print("KERNEL_OK")
</pallas_src>

<mosaic_0001>
module attributes {stable_mosaic.version = 11 : i64} {
  func.func @_policy_fused_kernel(%arg0: memref<2x8x16xf32, #tpu.memory_space<vmem>>, %arg1: memref<2x2x32xf32, #tpu.memory_space<vmem>>, %arg2: memref<144x384xbf16, #tpu.memory_space<vmem>>, %arg3: memref<8x384xf32, #tpu.memory_space<vmem>>, %arg4: memref<2x16xf32, #tpu.memory_space<vmem>>, %arg5: memref<2x2x32xf32, #tpu.memory_space<vmem>>) attributes {dimension_semantics = [], scalar_prefetch = 0 : i64, scratch_operands = 0 : i64, tpu.core_type = #tpu.core_type<tc>} {
    %c0 = arith.constant 0 : index
    %c0_0 = arith.constant 0 : index
    %0 = vector.load %arg3[%c0, %c0_0] : memref<8x384xf32, #tpu.memory_space<vmem>>, vector<8x384xf32>
    %c0_1 = arith.constant 0 : index
    %c0_2 = arith.constant 0 : index
    %c0_3 = arith.constant 0 : index
    %1 = vector.load %arg0[%c0_1, %c0_2, %c0_3] : memref<2x8x16xf32, #tpu.memory_space<vmem>>, vector<2x8x16xf32>
    %2 = vector.shape_cast %1 : vector<2x8x16xf32> to vector<16x16xf32>
    %3 = arith.truncf %2 : vector<16x16xf32> to vector<16x16xbf16>
    %c0_4 = arith.constant 0 : index
    %c0_5 = arith.constant 0 : index
    %4 = vector.load %arg2[%c0_4, %c0_5] : memref<144x384xbf16, #tpu.memory_space<vmem>>, vector<16x384xbf16>
    %cst = arith.constant dense<0.000000e+00> : vector<16x384xf32>
    %5 = tpu.matmul %3, %4, %cst {dimension_numbers = #tpu.dot_dimension_numbers<[1], [0], [0], [1], [0, 0, 1, 1], [], []>} : vector<16x16xbf16>, vector<16x384xbf16>, vector<16x384xf32> -> vector<16x384xf32>
    %6 = vector.extract_strided_slice %0 {offsets = [0, 0], sizes = [1, 384], strides = [1, 1]} : vector<8x384xf32> to vector<1x384xf32>
    %7 = vector.broadcast %6 : vector<1x384xf32> to vector<16x384xf32>
    %8 = arith.addf %5, %7 : vector<16x384xf32>
    %9 = vector.shape_cast %8 : vector<16x384xf32> to vector<2x8x384xf32>
    %10 = vector.extract_strided_slice %9 {offsets = [0, 0, 0], sizes = [2, 1, 384], strides = [1, 1, 1]} : vector<2x8x384xf32> to vector<2x1x384xf32>
    %11 = vector.shape_cast %10 : vector<2x1x384xf32> to vector<2x384xf32>
    %12 = vector.extract_strided_slice %9 {offsets = [0, 1, 0], sizes = [2, 1, 384], strides = [1, 1, 1]} : vector<2x8x384xf32> to vector<2x1x384xf32>
    %13 = vector.shape_cast %12 : vector<2x1x384xf32> to vector<2x384xf32>
    %14 = vector.extract_strided_slice %9 {offsets = [0, 2, 0], sizes = [2, 1, 384], strides = [1, 1, 1]} : vector<2x8x384xf32> to vector<2x1x384xf32>
    %15 = vector.shape_cast %14 : vector<2x1x384xf32> to vector<2x384xf32>
    %16 = vector.extract_strided_slice %9 {offsets = [0, 3, 0], sizes = [2, 1, 384], strides = [1, 1, 1]} : vector<2x8x384xf32> to vector<2x1x384xf32>
    %17 = vector.shape_cast %16 : vector<2x1x384xf32> to vector<2x384xf32>
    %18 = vector.extract_strided_slice %9 {offsets = [0, 4, 0], sizes = [2, 1, 384], strides = [1, 1, 1]} : vector<2x8x384xf32> to vector<2x1x384xf32>
    %19 = vector.shape_cast %18 : vector<2x1x384xf32> to vector<2x384xf32>
    %20 = vector.extract_strided_slice %9 {offsets = [0, 5, 0], sizes = [2, 1, 384], strides = [1, 1, 1]} : vector<2x8x384xf32> to vector<2x1x384xf32>
    %21 = vector.shape_cast %20 : vector<2x1x384xf32> to vector<2x384xf32>
    %22 = vector.extract_strided_slice %9 {offsets = [0, 6, 0], sizes = [2, 1, 384], strides = [1, 1, 1]} : vector<2x8x384xf32> to vector<2x1x384xf32>
    %23 = vector.shape_cast %22 : vector<2x1x384xf32> to vector<2x384xf32>
    %24 = vector.extract_strided_slice %9 {offsets = [0, 7, 0], sizes = [2, 1, 384], strides = [1, 1, 1]} : vector<2x8x384xf32> to vector<2x1x384xf32>
    %25 = vector.shape_cast %24 : vector<2x1x384xf32> to vector<2x384xf32>
    %c16 = arith.constant 16 : index
    %c0_6 = arith.constant 0 : index
    %26 = vector.load %arg2[%c16, %c0_6] : memref<144x384xbf16, #tpu.memory_space<vmem>>, vector<32x384xbf16>
    %27 = vector.extract_strided_slice %0 {offsets = [2, 0], sizes = [1, 32], strides = [1, 1]} : vector<8x384xf32> to vector<1x32xf32>
    %c0_7 = arith.constant 0 : index
    %c0_8 = arith.constant 0 : index
    %c0_9 = arith.constant 0 : index
    %28 = vector.load %arg1[%c0_7, %c0_8, %c0_9] : memref<2x2x32xf32, #tpu.memory_space<vmem>>, vector<1x2x32xf32>
    %29 = vector.shape_cast %28 : vector<1x2x32xf32> to vector<2x32xf32>
    %30 = arith.truncf %29 : vector<2x32xf32> to vector<2x32xbf16>
    %cst_10 = arith.constant dense<0.000000e+00> : vector<2x384xf32>
    %31 = tpu.matmul %30, %26, %cst_10 {dimension_numbers = #tpu.dot_dimension_numbers<[1], [0], [0], [1], [0, 0, 1, 1], [], []>} : vector<2x32xbf16>, vector<32x384xbf16>, vector<2x384xf32> -> vector<2x384xf32>
    %32 = vector.extract_strided_slice %11 {offsets = [0, 0], sizes = [2, 32], strides = [1, 1]} : vector<2x384xf32> to vector<2x32xf32>
    %33 = vector.extract_strided_slice %31 {offsets = [0, 0], sizes = [2, 32], strides = [1, 1]} : vector<2x384xf32> to vector<2x32xf32>
    %34 = arith.addf %32, %33 : vector<2x32xf32>
    %35 = arith.negf %34 : vector<2x32xf32>
    %36 = math.exp %35 : vector<2x32xf32>
    %cst_11 = arith.constant 1.000000e+00 : f32
    %37 = vector.broadcast %cst_11 : f32 to vector<2x32xf32>
    %38 = arith.addf %37, %36 : vector<2x32xf32>
    %39 = arith.divf %37, %38 : vector<2x32xf32>
    %40 = vector.extract_strided_slice %11 {offsets = [0, 128], sizes = [2, 32], strides = [1, 1]} : vector<2x384xf32> to vector<2x32xf32>
    %41 = vector.extract_strided_slice %31 {offsets = [0, 128], sizes = [2, 32], strides = [1, 1]} : vector<2x384xf32> to vector<2x32xf32>
    %42 = arith.addf %40, %41 : vector<2x32xf32>
    %43 = arith.negf %42 : vector<2x32xf32>
    %44 = math.exp %43 : vector<2x32xf32>
    %cst_12 = arith.constant 1.000000e+00 : f32
    %45 = vector.broadcast %cst_12 : f32 to vector<2x32xf32>
    %46 = arith.addf %45, %44 : vector<2x32xf32>
    %47 = arith.divf %45, %46 : vector<2x32xf32>
    %48 = vector.extract_strided_slice %11 {offsets = [0, 256], sizes = [2, 32], strides = [1, 1]} : vector<2x384xf32> to vector<2x32xf32>
    %49 = vector.extract_strided_slice %31 {offsets = [0, 256], sizes = [2, 32], strides = [1, 1]} : vector<2x384xf32> to vector<2x32xf32>
    %50 = vector.broadcast %27 : vector<1x32xf32> to vector<2x32xf32>
    %51 = arith.addf %49, %50 : vector<2x32xf32>
    %52 = arith.mulf %39, %51 : vector<2x32xf32>
    %53 = arith.addf %48, %52 : vector<2x32xf32>
    %54 = math.tanh %53 : vector<2x32xf32>
    %55 = arith.subf %29, %54 : vector<2x32xf32>
    %56 = arith.mulf %47, %55 : vector<2x32xf32>
    %57 = arith.addf %54, %56 : vector<2x32xf32>
    %58 = arith.truncf %57 : vector<2x32xf32> to vector<2x32xbf16>
    %cst_13 = arith.constant dense<0.000000e+00> : vector<2x384xf32>
    %59 = tpu.matmul %58, %26, %cst_13 {dimension_numbers = #tpu.dot_dimension_numbers<[1], [0], [0], [1], [0, 0, 1, 1], [], []>} : vector<2x32xbf16>, vector<32x384xbf16>, vector<2x384xf32> -> vector<2x384xf32>
    %60 = vector.extract_strided_slice %13 {offsets = [0, 0], sizes = [2, 32], strides = [1, 1]} : vector<2x384xf32> to vector<2x32xf32>
    %61 = vector.extract_strided_slice %59 {offsets = [0, 0], sizes = [2, 32], strides = [1, 1]} : vector<2x384xf32> to vector<2x32xf32>
    %62 = arith.addf %60, %61 : vector<2x32xf32>
    %63 = arith.negf %62 : vector<2x32xf32>
    %64 = math.exp %63 : vector<2x32xf32>
    %cst_14 = arith.constant 1.000000e+00 : f32
    %65 = vector.broadcast %cst_14 : f32 to vector<2x32xf32>
    %66 = arith.addf %65, %64 : vector<2x32xf32>
    %67 = arith.divf %65, %66 : vector<2x32xf32>
    %68 = vector.extract_strided_slice %13 {offsets = [0, 128], sizes = [2, 32], strides = [1, 1]} : vector<2x384xf32> to vector<2x32xf32>
    %69 = vector.extract_strided_slice %59 {offsets = [0, 128], sizes = [2, 32], strides = [1, 1]} : vector<2x384xf32> to vector<2x32xf32>
    %70 = arith.addf %68, %69 : vector<2x32xf32>
    %71 = arith.negf %70 : vector<2x32xf32>
    %72 = math.exp %71 : vector<2x32xf32>
    %cst_15 = arith.constant 1.000000e+00 : f32
    %73 = vector.broadcast %cst_15 : f32 to vector<2x32xf32>
    %74 = arith.addf %73, %72 : vector<2x32xf32>
    %75 = arith.divf %73, %74 : vector<2x32xf32>
    %76 = vector.extract_strided_slice %13 {offsets = [0, 256], sizes = [2, 32], strides = [1, 1]} : vector<2x384xf32> to vector<2x32xf32>
    %77 = vector.extract_strided_slice %59 {offsets = [0, 256], sizes = [2, 32], strides = [1, 1]} : vector<2x384xf32> to vector<2x32xf32>
    %78 = vector.broadcast %27 : vector<1x32xf32> to vector<2x32xf32>
    %79 = arith.addf %77, %78 : vector<2x32xf32>
    %80 = arith.mulf %67, %79 : vector<2x32xf32>
    %81 = arith.addf %76, %80 : vector<2x32xf32>
    %82 = math.tanh %81 : vector<2x32xf32>
    %83 = arith.subf %57, %82 : vector<2x32xf32>
    %84 = arith.mulf %75, %83 : vector<2x32xf32>
    %85 = arith.addf %82, %84 : vector<2x32xf32>
    %86 = arith.truncf %85 : vector<2x32xf32> to vector<2x32xbf16>
    %cst_16 = arith.constant dense<0.000000e+00> : vector<2x384xf32>
    %87 = tpu.matmul %86, %26, %cst_16 {dimension_numbers = #tpu.dot_dimension_numbers<[1], [0], [0], [1], [0, 0, 1, 1], [], []>} : vector<2x32xbf16>, vector<32x384xbf16>, vector<2x384xf32> -> vector<2x384xf32>
    %88 = vector.extract_strided_slice %15 {offsets = [0, 0], sizes = [2, 32], strides = [1, 1]} : vector<2x384xf32> to vector<2x32xf32>
    %89 = vector.extract_strided_slice %87 {offsets = [0, 0], sizes = [2, 32], strides = [1, 1]} : vector<2x384xf32> to vector<2x32xf32>
    %90 = arith.addf %88, %89 : vector<2x32xf32>
    %91 = arith.negf %90 : vector<2x32xf32>
    %92 = math.exp %91 : vector<2x32xf32>
    %cst_17 = arith.constant 1.000000e+00 : f32
    %93 = vector.broadcast %cst_17 : f32 to vector<2x32xf32>
    %94 = arith.addf %93, %92 : vector<2x32xf32>
    %95 = arith.divf %93, %94 : vector<2x32xf32>
    %96 = vector.extract_strided_slice %15 {offsets = [0, 128], sizes = [2, 32], strides = [1, 1]} : vector<2x384xf32> to vector<2x32xf32>
    %97 = vector.extract_strided_slice %87 {offsets = [0, 128], sizes = [2, 32], strides = [1, 1]} : vector<2x384xf32> to vector<2x32xf32>
    %98 = arith.addf %96, %97 : vector<2x32xf32>
    %99 = arith.negf %98 : vector<2x32xf32>
    %100 = math.exp %99 : vector<2x32xf32>
    %cst_18 = arith.constant 1.000000e+00 : f32
    %101 = vector.broadcast %cst_18 : f32 to vector<2x32xf32>
    %102 = arith.addf %101, %100 : vector<2x32xf32>
    %103 = arith.divf %101, %102 : vector<2x32xf32>
    %104 = vector.extract_strided_slice %15 {offsets = [0, 256], sizes = [2, 32], strides = [1, 1]} : vector<2x384xf32> to vector<2x32xf32>
    %105 = vector.extract_strided_slice %87 {offsets = [0, 256], sizes = [2, 32], strides = [1, 1]} : vector<2x384xf32> to vector<2x32xf32>
    %106 = vector.broadcast %27 : vector<1x32xf32> to vector<2x32xf32>
    %107 = arith.addf %105, %106 : vector<2x32xf32>
    %108 = arith.mulf %95, %107 : vector<2x32xf32>
    %109 = arith.addf %104, %108 : vector<2x32xf32>
    %110 = math.tanh %109 : vector<2x32xf32>
    %111 = arith.subf %85, %110 : vector<2x32xf32>
    %112 = arith.mulf %103, %111 : vector<2x32xf32>
    %113 = arith.addf %110, %112 : vector<2x32xf32>
    %114 = arith.truncf %113 : vector<2x32xf32> to vector<2x32xbf16>
    %cst_19 = arith.constant dense<0.000000e+00> : vector<2x384xf32>
    %115 = tpu.matmul %114, %26, %cst_19 {dimension_numbers = #tpu.dot_dimension_numbers<[1], [0], [0], [1], [0, 0, 1, 1], [], []>} : vector<2x32xbf16>, vector<32x384xbf16>, vector<2x384xf32> -> vector<2x384xf32>
    %116 = vector.extract_strided_slice %17 {offsets = [0, 0], sizes = [2, 32], strides = [1, 1]} : vector<2x384xf32> to vector<2x32xf32>
    %117 = vector.extract_strided_slice %115 {offsets = [0, 0], sizes = [2, 32], strides = [1, 1]} : vector<2x384xf32> to vector<2x32xf32>
    %118 = arith.addf %116, %117 : vector<2x32xf32>
    %119 = arith.negf %118 : vector<2x32xf32>
    %120 = math.exp %119 : vector<2x32xf32>
    %cst_20 = arith.constant 1.000000e+00 : f32
    %121 = vector.broadcast %cst_20 : f32 to vector<2x32xf32>
    %122 = arith.addf %121, %120 : vector<2x32xf32>
    %123 = arith.divf %121, %122 : vector<2x32xf32>
    %124 = vector.extract_strided_slice %17 {offsets = [0, 128], sizes = [2, 32], strides = [1, 1]} : vector<2x384xf32> to vector<2x32xf32>
    %125 = vector.extract_strided_slice %115 {offsets = [0, 128], sizes = [2, 32], strides = [1, 1]} : vector<2x384xf32> to vector<2x32xf32>
    %126 = arith.addf %124, %125 : vector<2x32xf32>
    %127 = arith.negf %126 : vector<2x32xf32>
    %128 = math.exp %127 : vector<2x32xf32>
    %cst_21 = arith.constant 1.000000e+00 : f32
    %129 = vector.broadcast %cst_21 : f32 to vector<2x32xf32>
    %130 = arith.addf %129, %128 : vector<2x32xf32>
    %131 = arith.divf %129, %130 : vector<2x32xf32>
    %132 = vector.extract_strided_slice %17 {offsets = [0, 256], sizes = [2, 32], strides = [1, 1]} : vector<2x384xf32> to vector<2x32xf32>
    %133 = vector.extract_strided_slice %115 {offsets = [0, 256], sizes = [2, 32], strides = [1, 1]} : vector<2x384xf32> to vector<2x32xf32>
    %134 = vector.broadcast %27 : vector<1x32xf32> to vector<2x32xf32>
    %135 = arith.addf %133, %134 : vector<2x32xf32>
    %136 = arith.mulf %123, %135 : vector<2x32xf32>
    %137 = arith.addf %132, %136 : vector<2x32xf32>
    %138 = math.tanh %137 : vector<2x32xf32>
    %139 = arith.subf %113, %138 : vector<2x32xf32>
    %140 = arith.mulf %131, %139 : vector<2x32xf32>
    %141 = arith.addf %138, %140 : vector<2x32xf32>
    %142 = arith.truncf %141 : vector<2x32xf32> to vector<2x32xbf16>
    %cst_22 = arith.constant dense<0.000000e+00> : vector<2x384xf32>
    %143 = tpu.matmul %142, %26, %cst_22 {dimension_numbers = #tpu.dot_dimension_numbers<[1], [0], [0], [1], [0, 0, 1, 1], [], []>} : vector<2x32xbf16>, vector<32x384xbf16>, vector<2x384xf32> -> vector<2x384xf32>
    %144 = vector.extract_strided_slice %19 {offsets = [0, 0], sizes = [2, 32], strides = [1, 1]} : vector<2x384xf32> to vector<2x32xf32>
    %145 = vector.extract_strided_slice %143 {offsets = [0, 0], sizes = [2, 32], strides = [1, 1]} : vector<2x384xf32> to vector<2x32xf32>
    %146 = arith.addf %144, %145 : vector<2x32xf32>
    %147 = arith.negf %146 : vector<2x32xf32>
    %148 = math.exp %147 : vector<2x32xf32>
    %cst_23 = arith.constant 1.000000e+00 : f32
    %149 = vector.broadcast %cst_23 : f32 to vector<2x32xf32>
    %150 = arith.addf %149, %148 : vector<2x32xf32>
    %151 = arith.divf %149, %150 : vector<2x32xf32>
    %152 = vector.extract_strided_slice %19 {offsets = [0, 128], sizes = [2, 32], strides = [1, 1]} : vector<2x384xf32> to vector<2x32xf32>
    %153 = vector.extract_strided_slice %143 {offsets = [0, 128], sizes = [2, 32], strides = [1, 1]} : vector<2x384xf32> to vector<2x32xf32>
    %154 = arith.addf %152, %153 : vector<2x32xf32>
    %155 = arith.negf %154 : vector<2x32xf32>
    %156 = math.exp %155 : vector<2x32xf32>
    %cst_24 = arith.constant 1.000000e+00 : f32
    %157 = vector.broadcast %cst_24 : f32 to vector<2x32xf32>
    %158 = arith.addf %157, %156 : vector<2x32xf32>
    %159 = arith.divf %157, %158 : vector<2x32xf32>
    %160 = vector.extract_strided_slice %19 {offsets = [0, 256], sizes = [2, 32], strides = [1, 1]} : vector<2x384xf32> to vector<2x32xf32>
    %161 = vector.extract_strided_slice %143 {offsets = [0, 256], sizes = [2, 32], strides = [1, 1]} : vector<2x384xf32> to vector<2x32xf32>
    %162 = vector.broadcast %27 : vector<1x32xf32> to vector<2x32xf32>
    %163 = arith.addf %161, %162 : vector<2x32xf32>
    %164 = arith.mulf %151, %163 : vector<2x32xf32>
    %165 = arith.addf %160, %164 : vector<2x32xf32>
    %166 = math.tanh %165 : vector<2x32xf32>
    %167 = arith.subf %141, %166 : vector<2x32xf32>
    %168 = arith.mulf %159, %167 : vector<2x32xf32>
    %169 = arith.addf %166, %168 : vector<2x32xf32>
    %170 = arith.truncf %169 : vector<2x32xf32> to vector<2x32xbf16>
    %cst_25 = arith.constant dense<0.000000e+00> : vector<2x384xf32>
    %171 = tpu.matmul %170, %26, %cst_25 {dimension_numbers = #tpu.dot_dimension_numbers<[1], [0], [0], [1], [0, 0, 1, 1], [], []>} : vector<2x32xbf16>, vector<32x384xbf16>, vector<2x384xf32> -> vector<2x384xf32>
    %172 = vector.extract_strided_slice %21 {offsets = [0, 0], sizes = [2, 32], strides = [1, 1]} : vector<2x384xf32> to vector<2x32xf32>
    %173 = vector.extract_strided_slice %171 {offsets = [0, 0], sizes = [2, 32], strides = [1, 1]} : vector<2x384xf32> to vector<2x32xf32>
    %174 = arith.addf %172, %173 : vector<2x32xf32>
    %175 = arith.negf %174 : vector<2x32xf32>
    %176 = math.exp %175 : vector<2x32xf32>
    %cst_26 = arith.constant 1.000000e+00 : f32
    %177 = vector.broadcast %cst_26 : f32 to vector<2x32xf32>
    %178 = arith.addf %177, %176 : vector<2x32xf32>
    %179 = arith.divf %177, %178 : vector<2x32xf32>
    %180 = vector.extract_strided_slice %21 {offsets = [0, 128], sizes = [2, 32], strides = [1, 1]} : vector<2x384xf32> to vector<2x32xf32>
    %181 = vector.extract_strided_slice %171 {offsets = [0, 128], sizes = [2, 32], strides = [1, 1]} : vector<2x384xf32> to vector<2x32xf32>
    %182 = arith.addf %180, %181 : vector<2x32xf32>
    %183 = arith.negf %182 : vector<2x32xf32>
    %184 = math.exp %183 : vector<2x32xf32>
    %cst_27 = arith.constant 1.000000e+00 : f32
    %185 = vector.broadcast %cst_27 : f32 to vector<2x32xf32>
    %186 = arith.addf %185, %184 : vector<2x32xf32>
    %187 = arith.divf %185, %186 : vector<2x32xf32>
    %188 = vector.extract_strided_slice %21 {offsets = [0, 256], sizes = [2, 32], strides = [1, 1]} : vector<2x384xf32> to vector<2x32xf32>
    %189 = vector.extract_strided_slice %171 {offsets = [0, 256], sizes = [2, 32], strides = [1, 1]} : vector<2x384xf32> to vector<2x32xf32>
    %190 = vector.broadcast %27 : vector<1x32xf32> to vector<2x32xf32>
    %191 = arith.addf %189, %190 : vector<2x32xf32>
    %192 = arith.mulf %179, %191 : vector<2x32xf32>
    %193 = arith.addf %188, %192 : vector<2x32xf32>
    %194 = math.tanh %193 : vector<2x32xf32>
    %195 = arith.subf %169, %194 : vector<2x32xf32>
    %196 = arith.mulf %187, %195 : vector<2x32xf32>
    %197 = arith.addf %194, %196 : vector<2x32xf32>
    %198 = arith.truncf %197 : vector<2x32xf32> to vector<2x32xbf16>
    %cst_28 = arith.constant dense<0.000000e+00> : vector<2x384xf32>
    %199 = tpu.matmul %198, %26, %cst_28 {dimension_numbers = #tpu.dot_dimension_numbers<[1], [0], [0], [1], [0, 0, 1, 1], [], []>} : vector<2x32xbf16>, vector<32x384xbf16>, vector<2x384xf32> -> vector<2x384xf32>
    %200 = vector.extract_strided_slice %23 {offsets = [0, 0], sizes = [2, 32], strides = [1, 1]} : vector<2x384xf32> to vector<2x32xf32>
    %201 = vector.extract_strided_slice %199 {offsets = [0, 0], sizes = [2, 32], strides = [1, 1]} : vector<2x384xf32> to vector<2x32xf32>
    %202 = arith.addf %200, %201 : vector<2x32xf32>
    %203 = arith.negf %202 : vector<2x32xf32>
    %204 = math.exp %203 : vector<2x32xf32>
    %cst_29 = arith.constant 1.000000e+00 : f32
    %205 = vector.broadcast %cst_29 : f32 to vector<2x32xf32>
    %206 = arith.addf %205, %204 : vector<2x32xf32>
    %207 = arith.divf %205, %206 : vector<2x32xf32>
    %208 = vector.extract_strided_slice %23 {offsets = [0, 128], sizes = [2, 32], strides = [1, 1]} : vector<2x384xf32> to vector<2x32xf32>
    %209 = vector.extract_strided_slice %199 {offsets = [0, 128], sizes = [2, 32], strides = [1, 1]} : vector<2x384xf32> to vector<2x32xf32>
    %210 = arith.addf %208, %209 : vector<2x32xf32>
    %211 = arith.negf %210 : vector<2x32xf32>
    %212 = math.exp %211 : vector<2x32xf32>
    %cst_30 = arith.constant 1.000000e+00 : f32
    %213 = vector.broadcast %cst_30 : f32 to vector<2x32xf32>
    %214 = arith.addf %213, %212 : vector<2x32xf32>
    %215 = arith.divf %213, %214 : vector<2x32xf32>
    %216 = vector.extract_strided_slice %23 {offsets = [0, 256], sizes = [2, 32], strides = [1, 1]} : vector<2x384xf32> to vector<2x32xf32>
    %217 = vector.extract_strided_slice %199 {offsets = [0, 256], sizes = [2, 32], strides = [1, 1]} : vector<2x384xf32> to vector<2x32xf32>
    %218 = vector.broadcast %27 : vector<1x32xf32> to vector<2x32xf32>
    %219 = arith.addf %217, %218 : vector<2x32xf32>
    %220 = arith.mulf %207, %219 : vector<2x32xf32>
    %221 = arith.addf %216, %220 : vector<2x32xf32>
    %222 = math.tanh %221 : vector<2x32xf32>
    %223 = arith.subf %197, %222 : vector<2x32xf32>
    %224 = arith.mulf %215, %223 : vector<2x32xf32>
    %225 = arith.addf %222, %224 : vector<2x32xf32>
    %226 = arith.truncf %225 : vector<2x32xf32> to vector<2x32xbf16>
    %cst_31 = arith.constant dense<0.000000e+00> : vector<2x384xf32>
    %227 = tpu.matmul %226, %26, %cst_31 {dimension_numbers = #tpu.dot_dimension_numbers<[1], [0], [0], [1], [0, 0, 1, 1], [], []>} : vector<2x32xbf16>, vector<32x384xbf16>, vector<2x384xf32> -> vector<2x384xf32>
    %228 = vector.extract_strided_slice %25 {offsets = [0, 0], sizes = [2, 32], strides = [1, 1]} : vector<2x384xf32> to vector<2x32xf32>
    %229 = vector.extract_strided_slice %227 {offsets = [0, 0], sizes = [2, 32], strides = [1, 1]} : vector<2x384xf32> to vector<2x32xf32>
    %230 = arith.addf %228, %229 : vector<2x32xf32>
    %231 = arith.negf %230 : vector<2x32xf32>
    %232 = math.exp %231 : vector<2x32xf32>
    %cst_32 = arith.constant 1.000000e+00 : f32
    %233 = vector.broadcast %cst_32 : f32 to vector<2x32xf32>
    %234 = arith.addf %233, %232 : vector<2x32xf32>
    %235 = arith.divf %233, %234 : vector<2x32xf32>
    %236 = vector.extract_strided_slice %25 {offsets = [0, 128], sizes = [2, 32], strides = [1, 1]} : vector<2x384xf32> to vector<2x32xf32>
    %237 = vector.extract_strided_slice %227 {offsets = [0, 128], sizes = [2, 32], strides = [1, 1]} : vector<2x384xf32> to vector<2x32xf32>
    %238 = arith.addf %236, %237 : vector<2x32xf32>
    %239 = arith.negf %238 : vector<2x32xf32>
    %240 = math.exp %239 : vector<2x32xf32>
    %cst_33 = arith.constant 1.000000e+00 : f32
    %241 = vector.broadcast %cst_33 : f32 to vector<2x32xf32>
    %242 = arith.addf %241, %240 : vector<2x32xf32>
    %243 = arith.divf %241, %242 : vector<2x32xf32>
    %244 = vector.extract_strided_slice %25 {offsets = [0, 256], sizes = [2, 32], strides = [1, 1]} : vector<2x384xf32> to vector<2x32xf32>
    %245 = vector.extract_strided_slice %227 {offsets = [0, 256], sizes = [2, 32], strides = [1, 1]} : vector<2x384xf32> to vector<2x32xf32>
    %246 = vector.broadcast %27 : vector<1x32xf32> to vector<2x32xf32>
    %247 = arith.addf %245, %246 : vector<2x32xf32>
    %248 = arith.mulf %235, %247 : vector<2x32xf32>
    %249 = arith.addf %244, %248 : vector<2x32xf32>
    %250 = math.tanh %249 : vector<2x32xf32>
    %251 = arith.subf %225, %250 : vector<2x32xf32>
    %252 = arith.mulf %243, %251 : vector<2x32xf32>
    %253 = arith.addf %250, %252 : vector<2x32xf32>
    %c0_34 = arith.constant 0 : index
    %c0_35 = arith.constant 0 : index
    %c0_36 = arith.constant 0 : index
    %254 = vector.load %arg5[%c0_34, %c0_35, %c0_36] : memref<2x2x32xf32, #tpu.memory_space<vmem>>, vector<1x2x32xf32>
    %255 = vector.shape_cast %254 : vector<1x2x32xf32> to vector<2x32xf32>
    %256 = vector.shape_cast %253 : vector<2x32xf32> to vector<1x2x32xf32>
    tpu.vector_store %arg5[%c0_34, %c0_35, %c0_36], %256 {strides = array<i32>} : memref<2x2x32xf32, #tpu.memory_space<vmem>>, vector<1x2x32xf32>,
    %c80 = arith.constant 80 : index
    %c0_37 = arith.constant 0 : index
    %257 = vector.load %arg2[%c80, %c0_37] : memref<144x384xbf16, #tpu.memory_space<vmem>>, vector<32x384xbf16>
    %258 = vector.extract_strided_slice %0 {offsets = [3, 0], sizes = [1, 32], strides = [1, 1]} : vector<8x384xf32> to vector<1x32xf32>
    %c48 = arith.constant 48 : index
    %c0_38 = arith.constant 0 : index
    %259 = vector.load %arg2[%c48, %c0_38] : memref<144x384xbf16, #tpu.memory_space<vmem>>, vector<32x384xbf16>
    %260 = vector.extract_strided_slice %0 {offsets = [1, 0], sizes = [1, 384], strides = [1, 1]} : vector<8x384xf32> to vector<1x384xf32>
    %c1 = arith.constant 1 : index
    %c0_39 = arith.constant 0 : index
    %c0_40 = arith.constant 0 : index
    %261 = vector.load %arg1[%c1, %c0_39, %c0_40] : memref<2x2x32xf32, #tpu.memory_space<vmem>>, vector<1x2x32xf32>
    %262 = vector.shape_cast %261 : vector<1x2x32xf32> to vector<2x32xf32>
    %263 = arith.truncf %57 : vector<2x32xf32> to vector<2x32xbf16>
    %cst_41 = arith.constant dense<0.000000e+00> : vector<2x384xf32>
    %264 = tpu.matmul %263, %259, %cst_41 {dimension_numbers = #tpu.dot_dimension_numbers<[1], [0], [0], [1], [0, 0, 1, 1], [], []>} : vector<2x32xbf16>, vector<32x384xbf16>, vector<2x384xf32> -> vector<2x384xf32>
    %265 = vector.broadcast %260 : vector<1x384xf32> to vector<2x384xf32>
    %266 = arith.addf %264, %265 : vector<2x384xf32>
    %267 = arith.truncf %262 : vector<2x32xf32> to vector<2x32xbf16>
    %cst_42 = arith.constant dense<0.000000e+00> : vector<2x384xf32>
    %268 = tpu.matmul %267, %257, %cst_42 {dimension_numbers = #tpu.dot_dimension_numbers<[1], [0], [0], [1], [0, 0, 1, 1], [], []>} : vector<2x32xbf16>, vector<32x384xbf16>, vector<2x384xf32> -> vector<2x384xf32>
    %269 = vector.extract_strided_slice %266 {offsets = [0, 0], sizes = [2, 32], strides = [1, 1]} : vector<2x384xf32> to vector<2x32xf32>
    %270 = vector.extract_strided_slice %268 {offsets = [0, 0], sizes = [2, 32], strides = [1, 1]} : vector<2x384xf32> to vector<2x32xf32>
    %271 = arith.addf %269, %270 : vector<2x32xf32>
    %272 = arith.negf %271 : vector<2x32xf32>
    %273 = math.exp %272 : vector<2x32xf32>
    %cst_43 = arith.constant 1.000000e+00 : f32
    %274 = vector.broadcast %cst_43 : f32 to vector<2x32xf32>
    %275 = arith.addf %274, %273 : vector<2x32xf32>
    %276 = arith.divf %274, %275 : vector<2x32xf32>
    %277 = vector.extract_strided_slice %266 {offsets = [0, 128], sizes = [2, 32], strides = [1, 1]} : vector<2x384xf32> to vector<2x32xf32>
    %278 = vector.extract_strided_slice %268 {offsets = [0, 128], sizes = [2, 32], strides = [1, 1]} : vector<2x384xf32> to vector<2x32xf32>
    %279 = arith.addf %277, %278 : vector<2x32xf32>
    %280 = arith.negf %279 : vector<2x32xf32>
    %281 = math.exp %280 : vector<2x32xf32>
    %cst_44 = arith.constant 1.000000e+00 : f32
    %282 = vector.broadcast %cst_44 : f32 to vector<2x32xf32>
    %283 = arith.addf %282, %281 : vector<2x32xf32>
    %284 = arith.divf %282, %283 : vector<2x32xf32>
    %285 = vector.extract_strided_slice %266 {offsets = [0, 256], sizes = [2, 32], strides = [1, 1]} : vector<2x384xf32> to vector<2x32xf32>
    %286 = vector.extract_strided_slice %268 {offsets = [0, 256], sizes = [2, 32], strides = [1, 1]} : vector<2x384xf32> to vector<2x32xf32>
    %287 = vector.broadcast %258 : vector<1x32xf32> to vector<2x32xf32>
    %288 = arith.addf %286, %287 : vector<2x32xf32>
    %289 = arith.mulf %276, %288 : vector<2x32xf32>
    %290 = arith.addf %285, %289 : vector<2x32xf32>
    %291 = math.tanh %290 : vector<2x32xf32>
    %292 = arith.subf %262, %291 : vector<2x32xf32>
    %293 = arith.mulf %284, %292 : vector<2x32xf32>
    %294 = arith.addf %291, %293 : vector<2x32xf32>
    %295 = arith.truncf %85 : vector<2x32xf32> to vector<2x32xbf16>
    %cst_45 = arith.constant dense<0.000000e+00> : vector<2x384xf32>
    %296 = tpu.matmul %295, %259, %cst_45 {dimension_numbers = #tpu.dot_dimension_numbers<[1], [0], [0], [1], [0, 0, 1, 1], [], []>} : vector<2x32xbf16>, vector<32x384xbf16>, vector<2x384xf32> -> vector<2x384xf32>
    %297 = vector.broadcast %260 : vector<1x384xf32> to vector<2x384xf32>
    %298 = arith.addf %296, %297 : vector<2x384xf32>
    %299 = arith.truncf %294 : vector<2x32xf32> to vector<2x32xbf16>
    %cst_46 = arith.constant dense<0.000000e+00> : vector<2x384xf32>
    %300 = tpu.matmul %299, %257, %cst_46 {dimension_numbers = #tpu.dot_dimension_numbers<[1], [0], [0], [1], [0, 0, 1, 1], [], []>} : vector<2x32xbf16>, vector<32x384xbf16>, vector<2x384xf32> -> vector<2x384xf32>
    %301 = vector.extract_strided_slice %298 {offsets = [0, 0], sizes = [2, 32], strides = [1, 1]} : vector<2x384xf32> to vector<2x32xf32>
    %302 = vector.extract_strided_slice %300 {offsets = [0, 0], sizes = [2, 32], strides = [1, 1]} : vector<2x384xf32> to vector<2x32xf32>
    %303 = arith.addf %301, %302 : vector<2x32xf32>
    %304 = arith.negf %303 : vector<2x32xf32>
    %305 = math.exp %304 : vector<2x32xf32>
    %cst_47 = arith.constant 1.000000e+00 : f32
    %306 = vector.broadcast %cst_47 : f32 to vector<2x32xf32>
    %307 = arith.addf %306, %305 : vector<2x32xf32>
    %308 = arith.divf %306, %307 : vector<2x32xf32>
    %309 = vector.extract_strided_slice %298 {offsets = [0, 128], sizes = [2, 32], strides = [1, 1]} : vector<2x384xf32> to vector<2x32xf32>
    %310 = vector.extract_strided_slice %300 {offsets = [0, 128], sizes = [2, 32], strides = [1, 1]} : vector<2x384xf32> to vector<2x32xf32>
    %311 = arith.addf %309, %310 : vector<2x32xf32>
    %312 = arith.negf %311 : vector<2x32xf32>
    %313 = math.exp %312 : vector<2x32xf32>
    %cst_48 = arith.constant 1.000000e+00 : f32
    %314 = vector.broadcast %cst_48 : f32 to vector<2x32xf32>
    %315 = arith.addf %314, %313 : vector<2x32xf32>
    %316 = arith.divf %314, %315 : vector<2x32xf32>
    %317 = vector.extract_strided_slice %298 {offsets = [0, 256], sizes = [2, 32], strides = [1, 1]} : vector<2x384xf32> to vector<2x32xf32>
    %318 = vector.extract_strided_slice %300 {offsets = [0, 256], sizes = [2, 32], strides = [1, 1]} : vector<2x384xf32> to vector<2x32xf32>
    %319 = vector.broadcast %258 : vector<1x32xf32> to vector<2x32xf32>
    %320 = arith.addf %318, %319 : vector<2x32xf32>
    %321 = arith.mulf %308, %320 : vector<2x32xf32>
    %322 = arith.addf %317, %321 : vector<2x32xf32>
    %323 = math.tanh %322 : vector<2x32xf32>
    %324 = arith.subf %294, %323 : vector<2x32xf32>
    %325 = arith.mulf %316, %324 : vector<2x32xf32>
    %326 = arith.addf %323, %325 : vector<2x32xf32>
    %327 = arith.truncf %113 : vector<2x32xf32> to vector<2x32xbf16>
    %cst_49 = arith.constant dense<0.000000e+00> : vector<2x384xf32>
    %328 = tpu.matmul %327, %259, %cst_49 {dimension_numbers = #tpu.dot_dimension_numbers<[1], [0], [0], [1], [0, 0, 1, 1], [], []>} : vector<2x32xbf16>, vector<32x384xbf16>, vector<2x384xf32> -> vector<2x384xf32>
    %329 = vector.broadcast %260 : vector<1x384xf32> to vector<2x384xf32>
    %330 = arith.addf %328, %329 : vector<2x384xf32>
    %331 = arith.truncf %326 : vector<2x32xf32> to vector<2x32xbf16>
    %cst_50 = arith.constant dense<0.000000e+00> : vector<2x384xf32>
    %332 = tpu.matmul %331, %257, %cst_50 {dimension_numbers = #tpu.dot_dimension_numbers<[1], [0], [0], [1], [0, 0, 1, 1], [], []>} : vector<2x32xbf16>, vector<32x384xbf16>, vector<2x384xf32> -> vector<2x384xf32>
    %333 = vector.extract_strided_slice %330 {offsets = [0, 0], sizes = [2, 32], strides = [1, 1]} : vector<2x384xf32> to vector<2x32xf32>
    %334 = vector.extract_strided_slice %332 {offsets = [0, 0], sizes = [2, 32], strides = [1, 1]} : vector<2x384xf32> to vector<2x32xf32>
    %335 = arith.addf %333, %334 : vector<2x32xf32>
    %336 = arith.negf %335 : vector<2x32xf32>
    %337 = math.exp %336 : vector<2x32xf32>
    %cst_51 = arith.constant 1.000000e+00 : f32
    %338 = vector.broadcast %cst_51 : f32 to vector<2x32xf32>
    %339 = arith.addf %338, %337 : vector<2x32xf32>
    %340 = arith.divf %338, %339 : vector<2x32xf32>
    %341 = vector.extract_strided_slice %330 {offsets = [0, 128], sizes = [2, 32], strides = [1, 1]} : vector<2x384xf32> to vector<2x32xf32>
    %342 = vector.extract_strided_slice %332 {offsets = [0, 128], sizes = [2, 32], strides = [1, 1]} : vector<2x384xf32> to vector<2x32xf32>
    %343 = arith.addf %341, %342 : vector<2x32xf32>
    %344 = arith.negf %343 : vector<2x32xf32>
    %345 = math.exp %344 : vector<2x32xf32>
    %cst_52 = arith.constant 1.000000e+00 : f32
    %346 = vector.broadcast %cst_52 : f32 to vector<2x32xf32>
    %347 = arith.addf %346, %345 : vector<2x32xf32>
    %348 = arith.divf %346, %347 : vector<2x32xf32>
    %349 = vector.extract_strided_slice %330 {offsets = [0, 256], sizes = [2, 32], strides = [1, 1]} : vector<2x384xf32> to vector<2x32xf32>
    %350 = vector.extract_strided_slice %332 {offsets = [0, 256], sizes = [2, 32], strides = [1, 1]} : vector<2x384xf32> to vector<2x32xf32>
    %351 = vector.broadcast %258 : vector<1x32xf32> to vector<2x32xf32>
    %352 = arith.addf %350, %351 : vector<2x32xf32>
    %353 = arith.mulf %340, %352 : vector<2x32xf32>
    %354 = arith.addf %349, %353 : vector<2x32xf32>
    %355 = math.tanh %354 : vector<2x32xf32>
    %356 = arith.subf %326, %355 : vector<2x32xf32>
    %357 = arith.mulf %348, %356 : vector<2x32xf32>
    %358 = arith.addf %355, %357 : vector<2x32xf32>
    %359 = arith.truncf %141 : vector<2x32xf32> to vector<2x32xbf16>
    %cst_53 = arith.constant dense<0.000000e+00> : vector<2x384xf32>
    %360 = tpu.matmul %359, %259, %cst_53 {dimension_numbers = #tpu.dot_dimension_numbers<[1], [0], [0], [1], [0, 0, 1, 1], [], []>} : vector<2x32xbf16>, vector<32x384xbf16>, vector<2x384xf32> -> vector<2x384xf32>
    %361 = vector.broadcast %260 : vector<1x384xf32> to vector<2x384xf32>
    %362 = arith.addf %360, %361 : vector<2x384xf32>
    %363 = arith.truncf %358 : vector<2x32xf32> to vector<2x32xbf16>
    %cst_54 = arith.constant dense<0.000000e+00> : vector<2x384xf32>
    %364 = tpu.matmul %363, %257, %cst_54 {dimension_numbers = #tpu.dot_dimension_numbers<[1], [0], [0], [1], [0, 0, 1, 1], [], []>} : vector<2x32xbf16>, vector<32x384xbf16>, vector<2x384xf32> -> vector<2x384xf32>
    %365 = vector.extract_strided_slice %362 {offsets = [0, 0], sizes = [2, 32], strides = [1, 1]} : vector<2x384xf32> to vector<2x32xf32>
    %366 = vector.extract_strided_slice %364 {offsets = [0, 0], sizes = [2, 32], strides = [1, 1]} : vector<2x384xf32> to vector<2x32xf32>
    %367 = arith.addf %365, %366 : vector<2x32xf32>
    %368 = arith.negf %367 : vector<2x32xf32>
    %369 = math.exp %368 : vector<2x32xf32>
    %cst_55 = arith.constant 1.000000e+00 : f32
    %370 = vector.broadcast %cst_55 : f32 to vector<2x32xf32>
    %371 = arith.addf %370, %369 : vector<2x32xf32>
    %372 = arith.divf %370, %371 : vector<2x32xf32>
    %373 = vector.extract_strided_slice %362 {offsets = [0, 128], sizes = [2, 32], strides = [1, 1]} : vector<2x384xf32> to vector<2x32xf32>
    %374 = vector.extract_strided_slice %364 {offsets = [0, 128], sizes = [2, 32], strides = [1, 1]} : vector<2x384xf32> to vector<2x32xf32>
    %375 = arith.addf %373, %374 : vector<2x32xf32>
    %376 = arith.negf %375 : vector<2x32xf32>
    %377 = math.exp %376 : vector<2x32xf32>
    %cst_56 = arith.constant 1.000000e+00 : f32
    %378 = vector.broadcast %cst_56 : f32 to vector<2x32xf32>
    %379 = arith.addf %378, %377 : vector<2x32xf32>
    %380 = arith.divf %378, %379 : vector<2x32xf32>
    %381 = vector.extract_strided_slice %362 {offsets = [0, 256], sizes = [2, 32], strides = [1, 1]} : vector<2x384xf32> to vector<2x32xf32>
    %382 = vector.extract_strided_slice %364 {offsets = [0, 256], sizes = [2, 32], strides = [1, 1]} : vector<2x384xf32> to vector<2x32xf32>
    %383 = vector.broadcast %258 : vector<1x32xf32> to vector<2x32xf32>
    %384 = arith.addf %382, %383 : vector<2x32xf32>
    %385 = arith.mulf %372, %384 : vector<2x32xf32>
    %386 = arith.addf %381, %385 : vector<2x32xf32>
    %387 = math.tanh %386 : vector<2x32xf32>
    %388 = arith.subf %358, %387 : vector<2x32xf32>
    %389 = arith.mulf %380, %388 : vector<2x32xf32>
    %390 = arith.addf %387, %389 : vector<2x32xf32>
    %391 = arith.truncf %169 : vector<2x32xf32> to vector<2x32xbf16>
    %cst_57 = arith.constant dense<0.000000e+00> : vector<2x384xf32>
    %392 = tpu.matmul %391, %259, %cst_57 {dimension_numbers = #tpu.dot_dimension_numbers<[1], [0], [0], [1], [0, 0, 1, 1], [], []>} : vector<2x32xbf16>, vector<32x384xbf16>, vector<2x384xf32> -> vector<2x384xf32>
    %393 = vector.broadcast %260 : vector<1x384xf32> to vector<2x384xf32>
    %394 = arith.addf %392, %393 : vector<2x384xf32>
    %395 = arith.truncf %390 : vector<2x32xf32> to vector<2x32xbf16>
    %cst_58 = arith.constant dense<0.000000e+00> : vector<2x384xf32>
    %396 = tpu.matmul %395, %257, %cst_58 {dimension_numbers = #tpu.dot_dimension_numbers<[1], [0], [0], [1], [0, 0, 1, 1], [], []>} : vector<2x32xbf16>, vector<32x384xbf16>, vector<2x384xf32> -> vector<2x384xf32>
    %397 = vector.extract_strided_slice %394 {offsets = [0, 0], sizes = [2, 32], strides = [1, 1]} : vector<2x384xf32> to vector<2x32xf32>
    %398 = vector.extract_strided_slice %396 {offsets = [0, 0], sizes = [2, 32], strides = [1, 1]} : vector<2x384xf32> to vector<2x32xf32>
    %399 = arith.addf %397, %398 : vector<2x32xf32>
    %400 = arith.negf %399 : vector<2x32xf32>
    %401 = math.exp %400 : vector<2x32xf32>
    %cst_59 = arith.constant 1.000000e+00 : f32
    %402 = vector.broadcast %cst_59 : f32 to vector<2x32xf32>
    %403 = arith.addf %402, %401 : vector<2x32xf32>
    %404 = arith.divf %402, %403 : vector<2x32xf32>
    %405 = vector.extract_strided_slice %394 {offsets = [0, 128], sizes = [2, 32], strides = [1, 1]} : vector<2x384xf32> to vector<2x32xf32>
    %406 = vector.extract_strided_slice %396 {offsets = [0, 128], sizes = [2, 32], strides = [1, 1]} : vector<2x384xf32> to vector<2x32xf32>
    %407 = arith.addf %405, %406 : vector<2x32xf32>
    %408 = arith.negf %407 : vector<2x32xf32>
    %409 = math.exp %408 : vector<2x32xf32>
    %cst_60 = arith.constant 1.000000e+00 : f32
    %410 = vector.broadcast %cst_60 : f32 to vector<2x32xf32>
    %411 = arith.addf %410, %409 : vector<2x32xf32>
    %412 = arith.divf %410, %411 : vector<2x32xf32>
    %413 = vector.extract_strided_slice %394 {offsets = [0, 256], sizes = [2, 32], strides = [1, 1]} : vector<2x384xf32> to vector<2x32xf32>
    %414 = vector.extract_strided_slice %396 {offsets = [0, 256], sizes = [2, 32], strides = [1, 1]} : vector<2x384xf32> to vector<2x32xf32>
    %415 = vector.broadcast %258 : vector<1x32xf32> to vector<2x32xf32>
    %416 = arith.addf %414, %415 : vector<2x32xf32>
    %417 = arith.mulf %404, %416 : vector<2x32xf32>
    %418 = arith.addf %413, %417 : vector<2x32xf32>
    %419 = math.tanh %418 : vector<2x32xf32>
    %420 = arith.subf %390, %419 : vector<2x32xf32>
    %421 = arith.mulf %412, %420 : vector<2x32xf32>
    %422 = arith.addf %419, %421 : vector<2x32xf32>
    %423 = arith.truncf %197 : vector<2x32xf32> to vector<2x32xbf16>
    %cst_61 = arith.constant dense<0.000000e+00> : vector<2x384xf32>
    %424 = tpu.matmul %423, %259, %cst_61 {dimension_numbers = #tpu.dot_dimension_numbers<[1], [0], [0], [1], [0, 0, 1, 1], [], []>} : vector<2x32xbf16>, vector<32x384xbf16>, vector<2x384xf32> -> vector<2x384xf32>
    %425 = vector.broadcast %260 : vector<1x384xf32> to vector<2x384xf32>
    %426 = arith.addf %424, %425 : vector<2x384xf32>
    %427 = arith.truncf %422 : vector<2x32xf32> to vector<2x32xbf16>
    %cst_62 = arith.constant dense<0.000000e+00> : vector<2x384xf32>
    %428 = tpu.matmul %427, %257, %cst_62 {dimension_numbers = #tpu.dot_dimension_numbers<[1], [0], [0], [1], [0, 0, 1, 1], [], []>} : vector<2x32xbf16>, vector<32x384xbf16>, vector<2x384xf32> -> vector<2x384xf32>
    %429 = vector.extract_strided_slice %426 {offsets = [0, 0], sizes = [2, 32], strides = [1, 1]} : vector<2x384xf32> to vector<2x32xf32>
    %430 = vector.extract_strided_slice %428 {offsets = [0, 0], sizes = [2, 32], strides = [1, 1]} : vector<2x384xf32> to vector<2x32xf32>
    %431 = arith.addf %429, %430 : vector<2x32xf32>
    %432 = arith.negf %431 : vector<2x32xf32>
    %433 = math.exp %432 : vector<2x32xf32>
    %cst_63 = arith.constant 1.000000e+00 : f32
    %434 = vector.broadcast %cst_63 : f32 to vector<2x32xf32>
    %435 = arith.addf %434, %433 : vector<2x32xf32>
    %436 = arith.divf %434, %435 : vector<2x32xf32>
    %437 = vector.extract_strided_slice %426 {offsets = [0, 128], sizes = [2, 32], strides = [1, 1]} : vector<2x384xf32> to vector<2x32xf32>
    %438 = vector.extract_strided_slice %428 {offsets = [0, 128], sizes = [2, 32], strides = [1, 1]} : vector<2x384xf32> to vector<2x32xf32>
    %439 = arith.addf %437, %438 : vector<2x32xf32>
    %440 = arith.negf %439 : vector<2x32xf32>
    %441 = math.exp %440 : vector<2x32xf32>
    %cst_64 = arith.constant 1.000000e+00 : f32
    %442 = vector.broadcast %cst_64 : f32 to vector<2x32xf32>
    %443 = arith.addf %442, %441 : vector<2x32xf32>
    %444 = arith.divf %442, %443 : vector<2x32xf32>
    %445 = vector.extract_strided_slice %426 {offsets = [0, 256], sizes = [2, 32], strides = [1, 1]} : vector<2x384xf32> to vector<2x32xf32>
    %446 = vector.extract_strided_slice %428 {offsets = [0, 256], sizes = [2, 32], strides = [1, 1]} : vector<2x384xf32> to vector<2x32xf32>
    %447 = vector.broadcast %258 : vector<1x32xf32> to vector<2x32xf32>
    %448 = arith.addf %446, %447 : vector<2x32xf32>
    %449 = arith.mulf %436, %448 : vector<2x32xf32>
    %450 = arith.addf %445, %449 : vector<2x32xf32>
    %451 = math.tanh %450 : vector<2x32xf32>
    %452 = arith.subf %422, %451 : vector<2x32xf32>
    %453 = arith.mulf %444, %452 : vector<2x32xf32>
    %454 = arith.addf %451, %453 : vector<2x32xf32>
    %455 = arith.truncf %225 : vector<2x32xf32> to vector<2x32xbf16>
    %cst_65 = arith.constant dense<0.000000e+00> : vector<2x384xf32>
    %456 = tpu.matmul %455, %259, %cst_65 {dimension_numbers = #tpu.dot_dimension_numbers<[1], [0], [0], [1], [0, 0, 1, 1], [], []>} : vector<2x32xbf16>, vector<32x384xbf16>, vector<2x384xf32> -> vector<2x384xf32>
    %457 = vector.broadcast %260 : vector<1x384xf32> to vector<2x384xf32>
    %458 = arith.addf %456, %457 : vector<2x384xf32>
    %459 = arith.truncf %454 : vector<2x32xf32> to vector<2x32xbf16>
    %cst_66 = arith.constant dense<0.000000e+00> : vector<2x384xf32>
    %460 = tpu.matmul %459, %257, %cst_66 {dimension_numbers = #tpu.dot_dimension_numbers<[1], [0], [0], [1], [0, 0, 1, 1], [], []>} : vector<2x32xbf16>, vector<32x384xbf16>, vector<2x384xf32> -> vector<2x384xf32>
    %461 = vector.extract_strided_slice %458 {offsets = [0, 0], sizes = [2, 32], strides = [1, 1]} : vector<2x384xf32> to vector<2x32xf32>
    %462 = vector.extract_strided_slice %460 {offsets = [0, 0], sizes = [2, 32], strides = [1, 1]} : vector<2x384xf32> to vector<2x32xf32>
    %463 = arith.addf %461, %462 : vector<2x32xf32>
    %464 = arith.negf %463 : vector<2x32xf32>
    %465 = math.exp %464 : vector<2x32xf32>
    %cst_67 = arith.constant 1.000000e+00 : f32
    %466 = vector.broadcast %cst_67 : f32 to vector<2x32xf32>
    %467 = arith.addf %466, %465 : vector<2x32xf32>
    %468 = arith.divf %466, %467 : vector<2x32xf32>
    %469 = vector.extract_strided_slice %458 {offsets = [0, 128], sizes = [2, 32], strides = [1, 1]} : vector<2x384xf32> to vector<2x32xf32>
    %470 = vector.extract_strided_slice %460 {offsets = [0, 128], sizes = [2, 32], strides = [1, 1]} : vector<2x384xf32> to vector<2x32xf32>
    %471 = arith.addf %469, %470 : vector<2x32xf32>
    %472 = arith.negf %471 : vector<2x32xf32>
    %473 = math.exp %472 : vector<2x32xf32>
    %cst_68 = arith.constant 1.000000e+00 : f32
    %474 = vector.broadcast %cst_68 : f32 to vector<2x32xf32>
    %475 = arith.addf %474, %473 : vector<2x32xf32>
    %476 = arith.divf %474, %475 : vector<2x32xf32>
    %477 = vector.extract_strided_slice %458 {offsets = [0, 256], sizes = [2, 32], strides = [1, 1]} : vector<2x384xf32> to vector<2x32xf32>
    %478 = vector.extract_strided_slice %460 {offsets = [0, 256], sizes = [2, 32], strides = [1, 1]} : vector<2x384xf32> to vector<2x32xf32>
    %479 = vector.broadcast %258 : vector<1x32xf32> to vector<2x32xf32>
    %480 = arith.addf %478, %479 : vector<2x32xf32>
    %481 = arith.mulf %468, %480 : vector<2x32xf32>
    %482 = arith.addf %477, %481 : vector<2x32xf32>
    %483 = math.tanh %482 : vector<2x32xf32>
    %484 = arith.subf %454, %483 : vector<2x32xf32>
    %485 = arith.mulf %476, %484 : vector<2x32xf32>
    %486 = arith.addf %483, %485 : vector<2x32xf32>
    %487 = arith.truncf %253 : vector<2x32xf32> to vector<2x32xbf16>
    %cst_69 = arith.constant dense<0.000000e+00> : vector<2x384xf32>
    %488 = tpu.matmul %487, %259, %cst_69 {dimension_numbers = #tpu.dot_dimension_numbers<[1], [0], [0], [1], [0, 0, 1, 1], [], []>} : vector<2x32xbf16>, vector<32x384xbf16>, vector<2x384xf32> -> vector<2x384xf32>
    %489 = vector.broadcast %260 : vector<1x384xf32> to vector<2x384xf32>
    %490 = arith.addf %488, %489 : vector<2x384xf32>
    %491 = arith.truncf %486 : vector<2x32xf32> to vector<2x32xbf16>
    %cst_70 = arith.constant dense<0.000000e+00> : vector<2x384xf32>
    %492 = tpu.matmul %491, %257, %cst_70 {dimension_numbers = #tpu.dot_dimension_numbers<[1], [0], [0], [1], [0, 0, 1, 1], [], []>} : vector<2x32xbf16>, vector<32x384xbf16>, vector<2x384xf32> -> vector<2x384xf32>
    %493 = vector.extract_strided_slice %490 {offsets = [0, 0], sizes = [2, 32], strides = [1, 1]} : vector<2x384xf32> to vector<2x32xf32>
    %494 = vector.extract_strided_slice %492 {offsets = [0, 0], sizes = [2, 32], strides = [1, 1]} : vector<2x384xf32> to vector<2x32xf32>
    %495 = arith.addf %493, %494 : vector<2x32xf32>
    %496 = arith.negf %495 : vector<2x32xf32>
    %497 = math.exp %496 : vector<2x32xf32>
    %cst_71 = arith.constant 1.000000e+00 : f32
    %498 = vector.broadcast %cst_71 : f32 to vector<2x32xf32>
    %499 = arith.addf %498, %497 : vector<2x32xf32>
    %500 = arith.divf %498, %499 : vector<2x32xf32>
    %501 = vector.extract_strided_slice %490 {offsets = [0, 128], sizes = [2, 32], strides = [1, 1]} : vector<2x384xf32> to vector<2x32xf32>
    %502 = vector.extract_strided_slice %492 {offsets = [0, 128], sizes = [2, 32], strides = [1, 1]} : vector<2x384xf32> to vector<2x32xf32>
    %503 = arith.addf %501, %502 : vector<2x32xf32>
    %504 = arith.negf %503 : vector<2x32xf32>
    %505 = math.exp %504 : vector<2x32xf32>
    %cst_72 = arith.constant 1.000000e+00 : f32
    %506 = vector.broadcast %cst_72 : f32 to vector<2x32xf32>
    %507 = arith.addf %506, %505 : vector<2x32xf32>
    %508 = arith.divf %506, %507 : vector<2x32xf32>
    %509 = vector.extract_strided_slice %490 {offsets = [0, 256], sizes = [2, 32], strides = [1, 1]} : vector<2x384xf32> to vector<2x32xf32>
    %510 = vector.extract_strided_slice %492 {offsets = [0, 256], sizes = [2, 32], strides = [1, 1]} : vector<2x384xf32> to vector<2x32xf32>
    %511 = vector.broadcast %258 : vector<1x32xf32> to vector<2x32xf32>
    %512 = arith.addf %510, %511 : vector<2x32xf32>
    %513 = arith.mulf %500, %512 : vector<2x32xf32>
    %514 = arith.addf %509, %513 : vector<2x32xf32>
    %515 = math.tanh %514 : vector<2x32xf32>
    %516 = arith.subf %486, %515 : vector<2x32xf32>
    %517 = arith.mulf %508, %516 : vector<2x32xf32>
    %518 = arith.addf %515, %517 : vector<2x32xf32>
    %c1_73 = arith.constant 1 : index
    %c0_74 = arith.constant 0 : index
    %c0_75 = arith.constant 0 : index
    %519 = vector.load %arg5[%c1_73, %c0_74, %c0_75] : memref<2x2x32xf32, #tpu.memory_space<vmem>>, vector<1x2x32xf32>
    %520 = vector.shape_cast %519 : vector<1x2x32xf32> to vector<2x32xf32>
    %521 = vector.shape_cast %518 : vector<2x32xf32> to vector<1x2x32xf32>
    tpu.vector_store %arg5[%c1_73, %c0_74, %c0_75], %521 {strides = array<i32>} : memref<2x2x32xf32, #tpu.memory_space<vmem>>, vector<1x2x32xf32>,
    %c112 = arith.constant 112 : index
    %c0_76 = arith.constant 0 : index
    %522 = vector.load %arg2[%c112, %c0_76] : memref<144x384xbf16, #tpu.memory_space<vmem>>, vector<32x384xbf16>
    %523 = arith.truncf %518 : vector<2x32xf32> to vector<2x32xbf16>
    %cst_77 = arith.constant dense<0.000000e+00> : vector<2x384xf32>
    %524 = tpu.matmul %523, %522, %cst_77 {dimension_numbers = #tpu.dot_dimension_numbers<[1], [0], [0], [1], [0, 0, 1, 1], [], []>} : vector<2x32xbf16>, vector<32x384xbf16>, vector<2x384xf32> -> vector<2x384xf32>
    %525 = vector.extract_strided_slice %524 {offsets = [0, 0], sizes = [2, 16], strides = [1, 1]} : vector<2x384xf32> to vector<2x16xf32>
    %526 = vector.extract_strided_slice %0 {offsets = [4, 0], sizes = [1, 16], strides = [1, 1]} : vector<8x384xf32> to vector<1x16xf32>
    %527 = vector.broadcast %526 : vector<1x16xf32> to vector<2x16xf32>
    %528 = arith.addf %525, %527 : vector<2x16xf32>
    %cst_78 = arith.constant 0.000000e+00 : f32
    %529 = vector.broadcast %cst_78 : f32 to vector<2x16xf32>
    %530 = arith.maximumf %528, %529 : vector<2x16xf32>
    %cst_79 = arith.constant dense<0xFF800000> : vector<2xf32>
    %531 = vector.multi_reduction <maximumf>, %530, %cst_79 [1] : vector<2x16xf32> to vector<2xf32>
    %532 = vector.shape_cast %531 : vector<2xf32> to vector<2x1xf32>
    %533 = vector.broadcast %532 : vector<2x1xf32> to vector<2x16xf32>
    %534 = arith.subf %530, %533 : vector<2x16xf32>
    %535 = math.exp %534 : vector<2x16xf32>
    %cst_80 = arith.constant dense<0.000000e+00> : vector<2xf32>
    %536 = vector.multi_reduction <add>, %535, %cst_80 [1] : vector<2x16xf32> to vector<2xf32>
    %537 = vector.shape_cast %536 : vector<2xf32> to vector<2x1xf32>
    %538 = vector.broadcast %537 : vector<2x1xf32> to vector<2x16xf32>
    %539 = arith.divf %535, %538 : vector<2x16xf32>
    %c0_81 = arith.constant 0 : index
    %c0_82 = arith.constant 0 : index
    %540 = vector.load %arg4[%c0_81, %c0_82] : memref<2x16xf32, #tpu.memory_space<vmem>>, vector<2x16xf32>
    tpu.vector_store %arg4[%c0_81, %c0_82], %539 {strides = array<i32>} : memref<2x16xf32, #tpu.memory_space<vmem>>, vector<2x16xf32>,
    return
  }
}

</mosaic_0001>

<bundles_post_ra>
// kernel: policy_forward.1
= control target key start
LH: loop header
LB: loop body
LE: loop exit
PB: predicated region body
PF: predicated region fallthrough
CT: control target
= control target key end

     0   :  { %11 = vsyncpa [#allocation3], 0  ;;  %s4811_s0 = inlined_call_operand.hbm [shape: f32[2,8,16], index: 0, kind: input, shape index: {}]   ;;  %s4812_s1 = inlined_call_operand.vmem [shape: f32[2,2,32], index: 1, kind: input, shape index: {}]   ;;  %s4813_s2 = inlined_call_operand.hbm [shape: bf16[144,384], index: 2, kind: input, shape index: {}]   ;;  %s4814_s3 = inlined_call_operand.hbm [shape: f32[8,384], index: 3, kind: input, shape index: {}]   ;;  %s4815_s4 = inlined_call_operand.hbm [shape: f32[2,16], index: 4, kind: output, shape index: {0}]   ;;  %s4816_s5 = inlined_call_operand.hbm [shape: f32[2,2,32], index: 5, kind: output, shape index: {1}]  }
   0x1   :  { %12 = vsyncpa [#allocation6], 0 }
   0x2   :  { %13 = vsyncpa [#allocation4], 0 }
   0x3   :  { %14 = vsyncpa [#allocation10], 0  ;;  %s4065_s18 = smov [#allocation5]  }
   0x4   :  { %s34_s19 = sshll.u32 %s4065_s18, 4  ;;  %s35_s19 = int_to_ptr.vmem [resolvable:$true] %s34_s19 }
   0x5   :  { %s3965_s20 = scalar_lea.vmem %s35_s19, 3456  ;;  %p3970_p1 = scmp.lt.s32.totalorder %s35_s19, %s35_s19 }
   0x6   :  { %p3966_p0 = scmp.ne.s32.totalorder %s35_s19, %s3965_s20  ;;  %p3971_p2 = scmp.lt.s32.totalorder %s3965_s20, %s3965_s20 }
   0x8   :  { %p3972_p3 = por %p3971_p2, %p3970_p1 }
   0xa   :  { %p3973_p4 = pnand %p3972_p3, %p3966_p0 }
   0xc   :  { %3976 = shalt.err (!%p3973_p4)
}
   0xd   :  { %s4066_s21 = smov 192   ;;  %s4067_s22 = smov 12  }
   0xe   :  { %40 = dma.hbm_to_vmem [thread:$0]  %s4813_s2, 3456, %s35_s19, [#allocation6], %s4066_s21, %s4066_s21, %s4067_s22  }
   0xf   :  { %s4068_s25 = smov [#allocation2]  }
  0x10   :  { %s20_s26 = sshll.u32 %s4068_s25, 4  ;;  %s21_s26 = int_to_ptr.vmem [resolvable:$true] %s20_s26 }
  0x11   :  { %s3985_s27 = scalar_lea.vmem %s21_s26, 256  ;;  %p3990_p6 = scmp.lt.s32.totalorder %s21_s26, %s21_s26 }
  0x12   :  { %p3986_p5 = scmp.ne.s32.totalorder %s21_s26, %s3985_s27  ;;  %p3991_p7 = scmp.lt.s32.totalorder %s3985_s27, %s3985_s27 }
  0x14   :  { %p3992_p8 = por %p3991_p7, %p3990_p6 }
  0x16   :  { %p3993_p9 = pnand %p3992_p8, %p3986_p5 }
  0x18   :  { %3996 = shalt.err (!%p3993_p9)
}
  0x19   :  { %s4069_s28 = smov 128   ;;  %s4070_s29 = smov 8  }
  0x1a   :  { %26 = dma.hbm_to_vmem [thread:$0]  %s4811_s0, 256, %s21_s26, [#allocation3], %s4069_s28, %s4069_s28, %s4070_s29  }
  0x1b   :  { %s4071_s7 = smov [#allocation7]  }
  0x1c   :  { %s47_s8 = sshll.u32 %s4071_s7, 4  ;;  %s48_s8 = int_to_ptr.vmem [resolvable:$true] %s47_s8 }
  0x1d   :  { %s4005_s2 = scalar_lea.vmem %s48_s8, 384  ;;  %p4010_p11 = scmp.lt.s32.totalorder %s48_s8, %s48_s8 }
  0x1e   :  { %p4006_p10 = scmp.ne.s32.totalorder %s48_s8, %s4005_s2  ;;  %p4011_p12 = scmp.lt.s32.totalorder %s4005_s2, %s4005_s2 }
  0x20   :  { %p4012_p13 = por %p4011_p12, %p4010_p11 }
  0x22   :  { %p4013_p0 = pnand %p4012_p13, %p4006_p10 }
  0x24   :  { %4016 = shalt.err (!%p4013_p0)
}
  0x25   :  { %50 = dma.hbm_to_vmem [thread:$0]  %s4814_s3, 384, %s48_s8, [#allocation6]  }
  0x26   :  { %4057 = dma.done.wait [#allocation3], 256  }
  0x27   :  { %4058 = vsyncadd [#allocation3], 4294967040 }
  0x28   :  { %4059 = dma.done.wait [#allocation6], 3840  }
  0x29   :  { %4060 = vsyncadd [#allocation6], 4294963456  ;;  %v4072_v0 = vmov 0   ;;  %v4073_v1 = vmov 0.0   ;;  %vm4074_vm0 = vmmov 0   ;;  %v64_v4 = vld [vmem:[#allocation2] sm:$0xff]  ;;  %v71_v16 = vlaneseq }
  0x2a   :  { %135 = vmatprep.mubr.bf16.mxu0 %v4072_v0  ;;  %3446 = vmatprep.subr.bf16.mxu1 %v4073_v1  ;;  %v3658_v2 = vld [vmem:[#allocation5 + $0x4] ss:$12 sps:$4 sm:$0xff]   ;;  %v3660_v3 = vld [vmem:[#allocation5] ss:$12 sps:$4 sm:$0xff]   ;;  %v65_v5 = vld [vmem:[#allocation2 + $0x8] sm:$0xff]  ;;  %vm99_vm1 = vcmask 130048  }
  0x2b   :  { %3448 = vmatprep.mubr.msk.bf16.mxu1 %vm4074_vm0, %v4073_v1  ;;  %117 = vmatprep.subr.bf16.mxu0 %v3658_v2  ;;  %v66_v6 = vpack.c.bf16 %v65_v5, %v64_v4  ;;  %v4122_v7 = vld [vmem:[#allocation5 + $0x34] ss:$12 sps:$4 sm:$0xff]   ;;  %v4124_v8 = vld [vmem:[#allocation5 + $0x30] ss:$12 sps:$4 sm:$0xff]   ;;  %v4130_v11 = vld [vmem:[#allocation5 + $0x18] ss:$12 sps:$4 sm:$0xff]  }
  0x2c   :  { %118 = vmatpush1.bf16.msra.mxu0 %v3660_v3  ;;  %v4127_v9 = vld [vmem:[#allocation5 + $0x1c] ss:$12 sps:$4 sm:$0xff]   ;;  %v4137_v12 = vld [vmem:[%s4812_s1] sm:$0x3]  ;;  %v4140_v13 = vld [vmem:[#allocation5 + $0x38] ss:$12 sps:$4 sm:$0xff]  }
  0x2d   :  { %245 = vmatprep.subr.bf16.mxu0 %v4122_v7  ;;  %v3667_v10 = vld [vmem:[#allocation5 + $0x8] ss:$12 sps:$4 sm:$0xff]   ;;  %v196_v14 = vpack.c.bf16 %v4137_v12, %v4137_v12  ;;  %v4145_v15 = vld [vmem:[#allocation5 + $0x20] ss:$12 sps:$4 sm:$0xff]   ;;  %vm229_vm2 = vcmask 261120   ;;  %v4169_v17 = vshrl.u32 %v71_v16, 7 }
  0x2e   :  { %3447 = vmatpush3.bf16.msra.mxu1 %v3667_v10  ;;  %v61_v19 = vld [vmem:[#allocation7] sm:$0xff]  ;;  %v62_v42 = vld [vmem:[#allocation7 + $0x8] sm:$0xff]  ;;  %v63_v60 = vld [vmem:[#allocation7 + $0x10] sm:$0xff]  ;;  %vm368_vm3 = vcmask 1041409   ;;  %vm1514_vm4 = vcmask 261127   ;;  %vm1516_vm5 = vcmask 253952  }
  0x2f   :  { %3250 = vmatmul.mubr.msk.bf16.vlgmr.msra.gmra.mxu0 %vm99_vm1, %v66_v6  ;;  %3452 = vmatprep.subr.bf16.mxu1 %v4073_v1  ;;  %v73_v18 = vsub.s32 0, %v4169_v17  ;;  %v352_v54 = vsub.s32 2, %v4169_v17  ;;  %vm3126_vm6 = vcmask 254976   ;;  %vm3202_vm7 = vcmask 123904  }
  0x30   :  { %246 = vmatpush1.bf16.msra.mxu0 %v4124_v8  ;;  %265 = vmatprep.mubr.bf16.mxu0 %v4072_v0 }
  0x31   :  { %247 = vmatprep.subr.bf16.mxu0 %v4127_v9  ;;  %3449 = vmatmul.mubr.msk.bf16.vlgmr.msra.gmra.mxu1 %vm99_vm1, %v66_v6  ;;  %v74_v22 = vrot.slane %v61_v19, %v73_v18  ;;  %v78_v45 = vrot.slane %v62_v42, %v73_v18  ;;  %v4185_v58 = vrot.slane %v61_v19, %v352_v54 }
  0x32   :  { %3453 = vmatpush3.bf16.msra.mxu1 %v4140_v13  ;;  %3456 = vmatprep.mubr.msk.bf16.mxu1 %vm4074_vm0, %v4073_v1  ;;  %v82_v61 = vrot.slane %v63_v60, %v73_v18 }
  0x33   :  { %3454 = vmatprep.subr.bf16.mxu1 %v4073_v1 }
  0x34   :  { %248 = vmatpush1.bf16.msra.mxu0 %v4130_v11 }
  0x35   :  { %404 = vmatprep.subr.bf16.mxu0 %v4122_v7 }
  0x36   :  { %3455 = vmatpush3.bf16.msra.mxu1 %v4145_v15 }
  0x37   :  { %3258 = vmatmul.mubr.msk.bf16.vlgmr.msra.gmra.mxu0 %vm229_vm2, %v196_v14  ;;  %3460 = vmatprep.subr.bf16.mxu1 %v4073_v1 }
  0x38   :  { %405 = vmatpush1.bf16.msra.mxu0 %v4124_v8  ;;  %424 = vmatprep.mubr.bf16.mxu0 %v4072_v0 }
  0x39   :  { %406 = vmatprep.subr.bf16.mxu0 %v4127_v9  ;;  %3457 = vmatmul.mubr.msk.bf16.vlgmr.msra.gmra.mxu1 %vm229_vm2, %v196_v14 }
  0x3a   :  { %3461 = vmatpush3.bf16.msra.mxu1 %v4140_v13  ;;  %3464 = vmatprep.mubr.msk.bf16.mxu1 %vm4074_vm0, %v4073_v1 }
  0x3b   :  { %3462 = vmatprep.subr.bf16.mxu1 %v4073_v1 }
  0x3c   :  { %407 = vmatpush1.bf16.msra.mxu0 %v4130_v11 }
  0x3d   :  { %562 = vmatprep.subr.bf16.mxu0 %v4122_v7 }
  0x3e   :  { %3463 = vmatpush3.bf16.msra.mxu1 %v4145_v15 }
  0x3f   :  { %3468 = vmatprep.subr.bf16.mxu1 %v4073_v1 }
  0xef   :  { %v137_v20 = vpop.f32.mrf.mxu0 }
  0xf0   :  { %v4172_v26 = vadd.f32 %v137_v20, %v74_v22 }
  0xf1   :  { %v139_v21 = vpop.f32.mrf.mxu0  ;;  %v180_v24 = vpop.f32.mrf.mxu1 }
  0xf2   :  { %v4178_v46 = vadd.f32 %v139_v21, %v78_v45  ;;  %v4188_v4 = vadd.f32 %v180_v24, %v82_v61 }
  0xf3   :  { %v141_v23 = vpop.f32.mrf.mxu0  ;;  %v3450_v27 = vpop.f32.mrf.mxu1 }
  0xf4   :  { %v4174_v29 = vadd.f32 %v141_v23, %v74_v22 }
  0xf5   :  { %v143_v25 = vpop.f32.mrf.mxu0  ;;  %v183_v32 = vpop.f32.mrf.mxu1 }
  0xf6   :  { %v4180_v49 = vadd.f32 %v143_v25, %v78_v45  ;;  %v4190_v5 = vadd.f32 %v183_v32, %v82_v61 }
  0xf7   :  { %v267_v28 = vpop.f32.mrf.mxu0  ;;  %v3451_v36 = vpop.f32.mrf.mxu1 }
  0xf8   :  { %v315_v30 = vrot.slane %v267_v28, 1  ;;  %v318_v31 = vadd.f32 %v267_v28, %v4172_v26 }
  0xf9   :  { %v269_v33 = vpop.f32.mrf.mxu0  ;;  %v308_v39 = vpop.f32.mrf.mxu1 }
  0xfa   :  { %v319_v34 = vadd.f32 %v315_v30, %v4174_v29  ;;  %v3260_v35 = vmul.f32 -1.442695, %v318_v31  ;;  %v333_v47 = vrot.slane %v269_v33, 1  ;;  %v336_v50 = vadd.f32 %v269_v33, %v4178_v46 }
  0xfb   :  { %v271_v37 = vpop.f32.mrf.mxu0  ;;  %v3458_v41 = vpop.f32.mrf.mxu1  ;;  %v354_v59 = vadd.f32 %v4185_v58, %v308_v39 }
  0xfc   :  { %3692 = vpow2.f32 %v3260_v35  ;;  %v3261_v38 = vmul.f32 -1.442695, %v319_v34  ;;  %v337_v53 = vadd.f32 %v333_v47, %v4180_v49  ;;  %v3262_v56 = vmul.f32 -1.442695, %v336_v50 }
  0xfd   :  { %v272_v40 = vpop.f32.mrf.mxu0  ;;  %v311_v43 = vpop.f32.mrf.mxu1  ;;  %v356_v62 = vrot.slane %v354_v59, 1 }
  0xfe   :  { %3694 = vpow2.f32 %v3261_v38  ;;  %v3263_v57 = vmul.f32 -1.442695, %v337_v53 }
  0xff   :  { %v3459_v44 = vpop.f32.mrf.mxu1 }
 0x109   :  { %v3693_v48 = vpop.eup %3692 }
 0x10a   :  { %v326_v51 = vadd.f32 1.0, %v3693_v48 }
 0x10b   :  { %v3695_v52 = vpop.eup %3694 }
 0x10c   :  { %v327_v55 = vadd.f32 1.0, %v3695_v52  ;;  %3696 = vrcp.f32 %v326_v51 }
 0x10e   :  { %3698 = vrcp.f32 %v327_v55 }
 0x10f   :  { %3700 = vpow2.f32 %v3262_v56 }
 0x110   :  { %3702 = vpow2.f32 %v3263_v57 }
 0x119   :  { %v3697_v63 = vpop.eup %3696 }
 0x11a   :  { %v359_v2 = vmul.f32 %v3697_v63, %v354_v59 }
 0x11b   :  { %v3699_v3 = vpop.eup %3698 }
 0x11c   :  { %v360_v6 = vmul.f32 %v3699_v3, %v356_v62  ;;  %v3701_v10 = vpop.eup %3700  ;;  %v361_v14 = vadd.f32 %v359_v2, %v4188_v4 }
 0x11d   :  { %v3703_v19 = vpop.eup %3702  ;;  %v344_v20 = vadd.f32 1.0, %v3701_v10 }
 0x11e   :  { %v362_v16 = vadd.f32 %v360_v6, %v4190_v5  ;;  %v345_v21 = vadd.f32 1.0, %v3703_v19 }
 0x120   :  { %3704 = vtanh.f32 %v362_v16 }
 0x121   :  { %3706 = vtanh.f32 %v361_v14 }
 0x122   :  { %3708 = vrcp.f32 %v344_v20 }
 0x123   :  { %3710 = vrcp.f32 %v345_v21 }
 0x12d   :  { %v3705_v18 = vpop.eup %3704 }
 0x12e   :  { %v367_v22 = vrot.slane %v3705_v18, 7  ;;  %v3707_v23 = vpop.eup %3706 }
 0x12f   :  { %v3709_v27 = vpop.eup %3708 }
 0x130   :  { %v369_v24 = vsel %vm368_vm3, %v367_v22, %v3707_v23  ;;  %v3711_v31 = vpop.eup %3710 }
 0x131   :  { %v371_v25 = vsub.f32 %v4137_v12, %v369_v24 }
 0x133   :  { %v376_v28 = vmul.f32 %v3709_v27, %v371_v25  ;;  %v373_v30 = vrot.slane %v371_v25, 1 }
 0x135   :  { %v4196_v32 = vadd.f32 %v3707_v23, %v376_v28  ;;  %v377_v33 = vmul.f32 %v3711_v31, %v373_v30 }
 0x137   :  { %v4198_v34 = vadd.f32 %v3705_v18, %v377_v33  ;;  %v380_v35 = vpack.c.bf16 %v4196_v32, %v4196_v32 }
 0x139   :  { %v381_v36 = vpack.c.bf16 %v4198_v34, %v4198_v34  ;;  %v384_v38 = vunpack.c.l.b16 %v380_v35 }
 0x13b   :  { %v385_v37 = vunpack.c.l.b16 %v381_v36 }
 0x13d   :  { %v386_v39 = vrot.slane %v385_v37, 7 }
 0x13f   :  { %v387_v12 = vsel %vm368_vm3, %v386_v39, %v384_v38 }
 0x140   :  { %v4205_v40 = vpack.c.b16 %v387_v12, %v387_v12 }
 0x142   :  { %3264 = vmatmul.mubr.msk.bf16.vlgmr.msra.gmra.mxu0 %vm229_vm2, %v4205_v40  ;;  %3465 = vmatmul.mubr.msk.bf16.vlgmr.msra.gmra.mxu1 %vm229_vm2, %v4205_v40 }
 0x143   :  { %563 = vmatpush1.bf16.msra.mxu0 %v4124_v8  ;;  %3469 = vmatpush3.bf16.msra.mxu1 %v4140_v13 }
 0x144   :  { %564 = vmatprep.subr.bf16.mxu0 %v4127_v9  ;;  %3470 = vmatprep.subr.bf16.mxu1 %v4073_v1 }
 0x145   :  { %582 = vmatprep.mubr.bf16.mxu0 %v4072_v0  ;;  %3472 = vmatprep.mubr.msk.bf16.mxu1 %vm4074_vm0, %v4073_v1 }
 0x147   :  { %565 = vmatpush1.bf16.msra.mxu0 %v4130_v11  ;;  %3471 = vmatpush3.bf16.msra.mxu1 %v4145_v15 }
 0x148   :  { %724 = vmatprep.subr.bf16.mxu0 %v4122_v7  ;;  %3476 = vmatprep.subr.bf16.mxu1 %v4073_v1 }
 0x202   :  { %v426_v41 = vpop.f32.mrf.mxu0  ;;  %v467_v42 = vpop.f32.mrf.mxu1 }
 0x203   :  { %v474_v43 = vrot.slane %v426_v41, 7  ;;  %v478_v44 = vadd.f32 %v426_v41, %v4174_v29  ;;  %v509_v6 = vadd.f32 %v467_v42, %v4185_v58 }
 0x204   :  { %v428_v45 = vpop.f32.mrf.mxu0  ;;  %v3466_v47 = vpop.f32.mrf.mxu1 }
 0x205   :  { %v477_v48 = vadd.f32 %v474_v43, %v4172_v26  ;;  %v3267_v50 = vmul.f32 -1.442695, %v478_v44  ;;  %v492_v56 = vrot.slane %v428_v45, 7  ;;  %v496_v57 = vadd.f32 %v428_v45, %v4180_v49 }
 0x206   :  { %v430_v51 = vpop.f32.mrf.mxu0  ;;  %v470_v52 = vpop.f32.mrf.mxu1  ;;  %v511_v14 = vrot.slane %v509_v6, 7 }
 0x207   :  { %v3266_v53 = vmul.f32 -1.442695, %v477_v48  ;;  %3712 = vpow2.f32 %v3267_v50  ;;  %v495_v61 = vadd.f32 %v492_v56, %v4178_v46  ;;  %v3269_v2 = vmul.f32 -1.442695, %v496_v57 }
 0x208   :  { %v431_v54 = vpop.f32.mrf.mxu0  ;;  %v3467_v55 = vpop.f32.mrf.mxu1 }
 0x209   :  { %3714 = vpow2.f32 %v3266_v53  ;;  %v3268_v3 = vmul.f32 -1.442695, %v495_v61 }
 0x214   :  { %v3713_v59 = vpop.eup %3712 }
 0x215   :  { %v486_v60 = vadd.f32 1.0, %v3713_v59 }
 0x216   :  { %v3715_v62 = vpop.eup %3714 }
 0x217   :  { %v485_v63 = vadd.f32 1.0, %v3715_v62  ;;  %3716 = vrcp.f32 %v486_v60 }
 0x219   :  { %3718 = vrcp.f32 %v485_v63 }
 0x21a   :  { %3720 = vpow2.f32 %v3269_v2 }
 0x21b   :  { %3722 = vpow2.f32 %v3268_v3 }
 0x224   :  { %v3717_v10 = vpop.eup %3716 }
 0x225   :  { %v515_v16 = vmul.f32 %v3717_v10, %v509_v6 }
 0x226   :  { %v3719_v19 = vpop.eup %3718 }
 0x227   :  { %v514_v20 = vmul.f32 %v3719_v19, %v511_v14  ;;  %v517_v21 = vadd.f32 %v515_v16, %v4190_v5  ;;  %v3721_v18 = vpop.eup %3720 }
 0x228   :  { %v3723_v23 = vpop.eup %3722  ;;  %v504_v24 = vadd.f32 1.0, %v3721_v18 }
 0x229   :  { %v516_v22 = vadd.f32 %v514_v20, %v4188_v4  ;;  %3724 = vtanh.f32 %v517_v21  ;;  %v503_v25 = vadd.f32 1.0, %v3723_v23 }
 0x22b   :  { %3726 = vtanh.f32 %v516_v22 }
 0x22c   :  { %3728 = vrcp.f32 %v504_v24 }
 0x22d   :  { %3730 = vrcp.f32 %v503_v25 }
 0x236   :  { %v3725_v27 = vpop.eup %3724 }
 0x237   :  { %v523_v28 = vrot.slane %v3725_v27, 1 }
 0x238   :  { %v3727_v30 = vpop.eup %3726 }
 0x239   :  { %v522_v31 = vrot.slane %v3727_v30, 1  ;;  %v527_v33 = vsub.f32 %v4198_v34, %v523_v28  ;;  %v3729_v37 = vpop.eup %3728 }
 0x23a   :  { %v3731_v12 = vpop.eup %3730 }
 0x23b   :  { %v526_v35 = vsub.f32 %v4196_v32, %v522_v31  ;;  %v531_v36 = vrot.slane %v527_v33, 7 }
 0x23d   :  { %v530_v38 = vrot.slane %v526_v35, 7  ;;  %v535_v39 = vmul.f32 %v3729_v37, %v531_v36 }
 0x23f   :  { %v534_v41 = vmul.f32 %v3731_v12, %v530_v38  ;;  %v4231_v42 = vadd.f32 %v3725_v27, %v535_v39 }
 0x241   :  { %v4233_v43 = vadd.f32 %v3727_v30, %v534_v41  ;;  %v539_v45 = vpack.c.bf16 %v4231_v42, %v4231_v42 }
 0x243   :  { %v538_v44 = vpack.c.bf16 %v4233_v43, %v4233_v43  ;;  %v543_v34 = vunpack.c.l.b16 %v539_v45 }
 0x245   :  { %v542_v47 = vunpack.c.l.b16 %v538_v44 }
 0x247   :  { %v544_v48 = vrot.slane %v542_v47, 1 }
 0x249   :  { %v545_v32 = vsel %vm368_vm3, %v543_v34, %v544_v48 }
 0x24a   :  { %v4240_v50 = vpack.c.b16 %v545_v32, %v545_v32 }
 0x24c   :  { %3270 = vmatmul.mubr.msk.bf16.vlgmr.msra.gmra.mxu0 %vm229_vm2, %v4240_v50  ;;  %3473 = vmatmul.mubr.msk.bf16.vlgmr.msra.gmra.mxu1 %vm229_vm2, %v4240_v50 }
 0x24d   :  { %725 = vmatpush1.bf16.msra.mxu0 %v4124_v8  ;;  %3477 = vmatpush3.bf16.msra.mxu1 %v4140_v13 }
 0x24e   :  { %726 = vmatprep.subr.bf16.mxu0 %v4127_v9  ;;  %3478 = vmatprep.subr.bf16.mxu1 %v4073_v1 }
 0x24f   :  { %744 = vmatprep.mubr.bf16.mxu0 %v4072_v0  ;;  %3480 = vmatprep.mubr.msk.bf16.mxu1 %vm4074_vm0, %v4073_v1 }
 0x251   :  { %727 = vmatpush1.bf16.msra.mxu0 %v4130_v11  ;;  %3479 = vmatpush3.bf16.msra.mxu1 %v4145_v15 }
 0x252   :  { %886 = vmatprep.subr.bf16.mxu0 %v4122_v7  ;;  %3484 = vmatprep.subr.bf16.mxu1 %v4073_v1 }
 0x30c   :  { %v584_v51 = vpop.f32.mrf.mxu0  ;;  %v625_v52 = vpop.f32.mrf.mxu1 }
 0x30d   :  { %v632_v53 = vrot.slane %v584_v51, 6  ;;  %v633_v54 = vrot.slane %v584_v51, 7  ;;  %v669_v24 = vadd.f32 %v625_v52, %v4185_v58 }
 0x30e   :  { %v586_v55 = vpop.f32.mrf.mxu0  ;;  %v3474_v56 = vpop.f32.mrf.mxu1 }
 0x30f   :  { %v636_v57 = vadd.f32 %v632_v53, %v4172_v26  ;;  %v637_v59 = vadd.f32 %v633_v54, %v4174_v29  ;;  %v651_v6 = vrot.slane %v586_v55, 6  ;;  %v652_v10 = vrot.slane %v586_v55, 7 }
 0x310   :  { %v588_v60 = vpop.f32.mrf.mxu0  ;;  %v628_v61 = vpop.f32.mrf.mxu1  ;;  %v671_v25 = vrot.slane %v669_v24, 6  ;;  %v672_v28 = vrot.slane %v669_v24, 7 }
 0x311   :  { %v3272_v62 = vmul.f32 -1.442695, %v636_v57  ;;  %v3273_v63 = vmul.f32 -1.442695, %v637_v59  ;;  %v655_v14 = vadd.f32 %v651_v6, %v4178_v46  ;;  %v656_v19 = vadd.f32 %v652_v10, %v4180_v49 }
 0x312   :  { %v589_v2 = vpop.f32.mrf.mxu0  ;;  %v3475_v3 = vpop.f32.mrf.mxu1 }
 0x313   :  { %3732 = vpow2.f32 %v3272_v62  ;;  %v3274_v22 = vmul.f32 -1.442695, %v655_v14  ;;  %v3275_v23 = vmul.f32 -1.442695, %v656_v19 }
 0x314   :  { %3734 = vpow2.f32 %v3273_v63 }
 0x320   :  { %v3733_v16 = vpop.eup %3732 }
 0x321   :  { %v3735_v20 = vpop.eup %3734  ;;  %v644_v21 = vadd.f32 1.0, %v3733_v16 }
 0x322   :  { %v645_v18 = vadd.f32 1.0, %v3735_v20 }
 0x323   :  { %3736 = vrcp.f32 %v644_v21 }
 0x324   :  { %3738 = vrcp.f32 %v645_v18 }
 0x325   :  { %3740 = vpow2.f32 %v3274_v22 }
 0x326   :  { %3742 = vpow2.f32 %v3275_v23 }
 0x330   :  { %v3737_v27 = vpop.eup %3736 }
 0x331   :  { %v3739_v30 = vpop.eup %3738  ;;  %v675_v31 = vmul.f32 %v3737_v27, %v671_v25 }
 0x332   :  { %v676_v33 = vmul.f32 %v3739_v30, %v672_v28  ;;  %v3741_v36 = vpop.eup %3740 }
 0x333   :  { %v677_v35 = vadd.f32 %v675_v31, %v4188_v4  ;;  %v3743_v38 = vpop.eup %3742  ;;  %v663_v39 = vadd.f32 1.0, %v3741_v36 }
 0x334   :  { %v678_v37 = vadd.f32 %v676_v33, %v4190_v5  ;;  %v664_v12 = vadd.f32 1.0, %v3743_v38 }
 0x335   :  { %3744 = vtanh.f32 %v677_v35 }
 0x336   :  { %3746 = vtanh.f32 %v678_v37 }
 0x337   :  { %3748 = vrcp.f32 %v663_v39 }
 0x338   :  { %3750 = vrcp.f32 %v664_v12 }
 0x342   :  { %v3745_v41 = vpop.eup %3744 }
 0x343   :  { %v3747_v44 = vpop.eup %3746  ;;  %v683_v45 = vrot.slane %v3745_v41, 1 }
 0x344   :  { %v684_v47 = vrot.slane %v3747_v44, 1  ;;  %v3749_v51 = vpop.eup %3748 }
 0x345   :  { %v687_v34 = vsub.f32 %v4233_v43, %v683_v45  ;;  %v3751_v53 = vpop.eup %3750 }
 0x346   :  { %v688_v48 = vsub.f32 %v4231_v42, %v684_v47 }
 0x347   :  { %v691_v32 = vrot.slane %v687_v34, 7 }
 0x348   :  { %v692_v52 = vrot.slane %v688_v48, 7 }
 0x349   :  { %v695_v54 = vmul.f32 %v3749_v51, %v691_v32 }
 0x34a   :  { %v696_v55 = vmul.f32 %v3751_v53, %v692_v52 }
 0x34b   :  { %v4266_v56 = vadd.f32 %v3745_v41, %v695_v54 }
 0x34c   :  { %v4268_v57 = vadd.f32 %v3747_v44, %v696_v55 }
 0x34d   :  { %v699_v59 = vpack.c.bf16 %v4266_v56, %v4266_v56 }
 0x34e   :  { %v700_v60 = vpack.c.bf16 %v4268_v57, %v4268_v57 }
 0x34f   :  { %v703_v61 = vunpack.c.l.b16 %v699_v59 }
 0x350   :  { %v704_v43 = vunpack.c.l.b16 %v700_v60 }
 0x351   :  { %v705_v62 = vrot.slane %v703_v61, 2 }
 0x352   :  { %v706_v42 = vrot.slane %v704_v43, 1 }
 0x354   :  { %v707_v63 = vsel %vm368_vm3, %v706_v42, %v705_v62 }
 0x355   :  { %v4275_v2 = vpack.c.b16 %v707_v63, %v707_v63 }
 0x357   :  { %3276 = vmatmul.mubr.msk.bf16.vlgmr.msra.gmra.mxu0 %vm229_vm2, %v4275_v2  ;;  %3481 = vmatmul.mubr.msk.bf16.vlgmr.msra.gmra.mxu1 %vm229_vm2, %v4275_v2 }
 0x358   :  { %887 = vmatpush1.bf16.msra.mxu0 %v4124_v8  ;;  %3485 = vmatpush3.bf16.msra.mxu1 %v4140_v13 }
 0x359   :  { %888 = vmatprep.subr.bf16.mxu0 %v4127_v9  ;;  %3486 = vmatprep.subr.bf16.mxu1 %v4073_v1 }
 0x35a   :  { %906 = vmatprep.mubr.bf16.mxu0 %v4072_v0  ;;  %3488 = vmatprep.mubr.msk.bf16.mxu1 %vm4074_vm0, %v4073_v1 }
 0x35c   :  { %889 = vmatpush1.bf16.msra.mxu0 %v4130_v11  ;;  %3487 = vmatpush3.bf16.msra.mxu1 %v4145_v15 }
 0x35d   :  { %1048 = vmatprep.subr.bf16.mxu0 %v4122_v7  ;;  %3492 = vmatprep.subr.bf16.mxu1 %v4073_v1 }
 0x417   :  { %v746_v3 = vpop.f32.mrf.mxu0  ;;  %v787_v6 = vpop.f32.mrf.mxu1 }
 0x418   :  { %v794_v10 = vrot.slane %v746_v3, 5  ;;  %v795_v14 = vrot.slane %v746_v3, 6  ;;  %v831_v41 = vadd.f32 %v787_v6, %v4185_v58 }
 0x419   :  { %v748_v16 = vpop.f32.mrf.mxu0  ;;  %v3482_v19 = vpop.f32.mrf.mxu1 }
 0x41a   :  { %v798_v20 = vadd.f32 %v794_v10, %v4172_v26  ;;  %v799_v21 = vadd.f32 %v795_v14, %v4174_v29  ;;  %v813_v28 = vrot.slane %v748_v16, 5  ;;  %v814_v30 = vrot.slane %v748_v16, 6 }
 0x41b   :  { %v750_v18 = vpop.f32.mrf.mxu0  ;;  %v790_v22 = vpop.f32.mrf.mxu1  ;;  %v833_v44 = vrot.slane %v831_v41, 5  ;;  %v834_v47 = vrot.slane %v831_v41, 6 }
 0x41c   :  { %v3278_v23 = vmul.f32 -1.442695, %v798_v20  ;;  %v3279_v24 = vmul.f32 -1.442695, %v799_v21  ;;  %v817_v31 = vadd.f32 %v813_v28, %v4178_v46  ;;  %v818_v35 = vadd.f32 %v814_v30, %v4180_v49 }
 0x41d   :  { %v751_v25 = vpop.f32.mrf.mxu0  ;;  %v3483_v27 = vpop.f32.mrf.mxu1 }
 0x41e   :  { %3752 = vpow2.f32 %v3278_v23  ;;  %v3280_v39 = vmul.f32 -1.442695, %v817_v31  ;;  %v3281_v12 = vmul.f32 -1.442695, %v818_v35 }
 0x41f   :  { %3754 = vpow2.f32 %v3279_v24 }
 0x42b   :  { %v3753_v33 = vpop.eup %3752 }
 0x42c   :  { %v3755_v36 = vpop.eup %3754  ;;  %v806_v37 = vadd.f32 1.0, %v3753_v33 }
 0x42d   :  { %v807_v38 = vadd.f32 1.0, %v3755_v36 }
 0x42e   :  { %3756 = vrcp.f32 %v806_v37 }
 0x42f   :  { %3758 = vrcp.f32 %v807_v38 }
 0x430   :  { %3760 = vpow2.f32 %v3280_v39 }
 0x431   :  { %3762 = vpow2.f32 %v3281_v12 }
 0x43b   :  { %v3757_v45 = vpop.eup %3756 }
 0x43c   :  { %v3759_v34 = vpop.eup %3758  ;;  %v837_v48 = vmul.f32 %v3757_v45, %v833_v44 }
 0x43d   :  { %v838_v32 = vmul.f32 %v3759_v34, %v834_v47  ;;  %v3761_v52 = vpop.eup %3760 }
 0x43e   :  { %v839_v51 = vadd.f32 %v837_v48, %v4188_v4  ;;  %v3763_v54 = vpop.eup %3762  ;;  %v825_v55 = vadd.f32 1.0, %v3761_v52 }
 0x43f   :  { %v840_v53 = vadd.f32 %v838_v32, %v4190_v5  ;;  %v826_v59 = vadd.f32 1.0, %v3763_v54 }
 0x440   :  { %3764 = vtanh.f32 %v839_v51 }
 0x441   :  { %3766 = vtanh.f32 %v840_v53 }
 0x442   :  { %3768 = vrcp.f32 %v825_v55 }
 0x443   :  { %3770 = vrcp.f32 %v826_v59 }
 0x44d   :  { %v3765_v60 = vpop.eup %3764 }
 0x44e   :  { %v3767_v61 = vpop.eup %3766  ;;  %v845_v43 = vrot.slane %v3765_v60, 1 }
 0x44f   :  { %v846_v62 = vrot.slane %v3767_v61, 1  ;;  %v3769_v6 = vpop.eup %3768 }
 0x450   :  { %v849_v42 = vsub.f32 %v4266_v56, %v845_v43  ;;  %v3771_v14 = vpop.eup %3770 }
 0x451   :  { %v850_v63 = vsub.f32 %v4268_v57, %v846_v62 }
 0x452   :  { %v853_v3 = vrot.slane %v849_v42, 7 }
 0x453   :  { %v854_v10 = vrot.slane %v850_v63, 7 }
 0x454   :  { %v857_v16 = vmul.f32 %v3769_v6, %v853_v3 }
 0x455   :  { %v858_v19 = vmul.f32 %v3771_v14, %v854_v10 }
 0x456   :  { %v4301_v20 = vadd.f32 %v3765_v60, %v857_v16 }
 0x457   :  { %v4303_v21 = vadd.f32 %v3767_v61, %v858_v19 }
 0x458   :  { %v861_v18 = vpack.c.bf16 %v4301_v20, %v4301_v20 }
 0x459   :  { %v862_v22 = vpack.c.bf16 %v4303_v21, %v4303_v21 }
 0x45a   :  { %v865_v23 = vunpack.c.l.b16 %v861_v18 }
 0x45b   :  { %v866_v56 = vunpack.c.l.b16 %v862_v22 }
 0x45c   :  { %v867_v24 = vrot.slane %v865_v23, 3 }
 0x45d   :  { %v868_v57 = vrot.slane %v866_v56, 2 }
 0x45f   :  { %v869_v25 = vsel %vm368_vm3, %v868_v57, %v867_v24 }
 0x460   :  { %v4310_v27 = vpack.c.b16 %v869_v25, %v869_v25 }
 0x462   :  { %3282 = vmatmul.mubr.msk.bf16.vlgmr.msra.gmra.mxu0 %vm229_vm2, %v4310_v27  ;;  %3489 = vmatmul.mubr.msk.bf16.vlgmr.msra.gmra.mxu1 %vm229_vm2, %v4310_v27 }
 0x463   :  { %1049 = vmatpush1.bf16.msra.mxu0 %v4124_v8  ;;  %3493 = vmatpush3.bf16.msra.mxu1 %v4140_v13 }
 0x464   :  { %1050 = vmatprep.subr.bf16.mxu0 %v4127_v9  ;;  %3494 = vmatprep.subr.bf16.mxu1 %v4073_v1 }
 0x465   :  { %1068 = vmatprep.mubr.bf16.mxu0 %v4072_v0  ;;  %3496 = vmatprep.mubr.msk.bf16.mxu1 %vm4074_vm0, %v4073_v1 }
 0x467   :  { %1051 = vmatpush1.bf16.msra.mxu0 %v4130_v11  ;;  %3495 = vmatpush3.bf16.msra.mxu1 %v4145_v15 }
 0x468   :  { %1210 = vmatprep.subr.bf16.mxu0 %v4122_v7  ;;  %3500 = vmatprep.subr.bf16.mxu1 %v4073_v1 }
 0x522   :  { %v908_v28 = vpop.f32.mrf.mxu0  ;;  %v949_v30 = vpop.f32.mrf.mxu1 }
 0x523   :  { %v956_v31 = vrot.slane %v908_v28, 4  ;;  %v957_v33 = vrot.slane %v908_v28, 5  ;;  %v993_v61 = vadd.f32 %v949_v30, %v4185_v58 }
 0x524   :  { %v910_v35 = vpop.f32.mrf.mxu0  ;;  %v3490_v36 = vpop.f32.mrf.mxu1 }
 0x525   :  { %v960_v37 = vadd.f32 %v956_v31, %v4172_v26  ;;  %v961_v38 = vadd.f32 %v957_v33, %v4174_v29  ;;  %v975_v34 = vrot.slane %v910_v35, 4  ;;  %v976_v48 = vrot.slane %v910_v35, 5 }
 0x526   :  { %v912_v39 = vpop.f32.mrf.mxu0  ;;  %v952_v12 = vpop.f32.mrf.mxu1  ;;  %v995_v43 = vrot.slane %v993_v61, 4  ;;  %v996_v42 = vrot.slane %v993_v61, 5 }
 0x527   :  { %v3284_v41 = vmul.f32 -1.442695, %v960_v37  ;;  %v3285_v44 = vmul.f32 -1.442695, %v961_v38  ;;  %v979_v32 = vadd.f32 %v975_v34, %v4178_v46  ;;  %v980_v52 = vadd.f32 %v976_v48, %v4180_v49 }
 0x528   :  { %v913_v45 = vpop.f32.mrf.mxu0  ;;  %v3491_v47 = vpop.f32.mrf.mxu1 }
 0x529   :  { %3772 = vpow2.f32 %v3284_v41  ;;  %v3286_v59 = vmul.f32 -1.442695, %v979_v32  ;;  %v3287_v60 = vmul.f32 -1.442695, %v980_v52 }
 0x52a   :  { %3774 = vpow2.f32 %v3285_v44 }
 0x536   :  { %v3773_v51 = vpop.eup %3772 }
 0x537   :  { %v3775_v53 = vpop.eup %3774  ;;  %v968_v54 = vadd.f32 1.0, %v3773_v51 }
 0x538   :  { %v969_v55 = vadd.f32 1.0, %v3775_v53 }
 0x539   :  { %3776 = vrcp.f32 %v968_v54 }
 0x53a   :  { %3778 = vrcp.f32 %v969_v55 }
 0x53b   :  { %3780 = vpow2.f32 %v3286_v59 }
 0x53c   :  { %3782 = vpow2.f32 %v3287_v60 }
 0x546   :  { %v3777_v62 = vpop.eup %3776 }
 0x547   :  { %v3779_v63 = vpop.eup %3778  ;;  %v999_v3 = vmul.f32 %v3777_v62, %v995_v43 }
 0x548   :  { %v1000_v6 = vmul.f32 %v3779_v63, %v996_v42  ;;  %v3781_v14 = vpop.eup %3780 }
 0x549   :  { %v1001_v10 = vadd.f32 %v999_v3, %v4188_v4  ;;  %v3783_v19 = vpop.eup %3782  ;;  %v987_v18 = vadd.f32 1.0, %v3781_v14 }
 0x54a   :  { %v1002_v16 = vadd.f32 %v1000_v6, %v4190_v5  ;;  %v988_v22 = vadd.f32 1.0, %v3783_v19 }
 0x54b   :  { %3784 = vtanh.f32 %v1001_v10 }
 0x54c   :  { %3786 = vtanh.f32 %v1002_v16 }
 0x54d   :  { %3788 = vrcp.f32 %v987_v18 }
 0x54e   :  { %3790 = vrcp.f32 %v988_v22 }
 0x558   :  { %v3785_v23 = vpop.eup %3784 }
 0x559   :  { %v3787_v56 = vpop.eup %3786  ;;  %v1007_v24 = vrot.slane %v3785_v23, 1 }
 0x55a   :  { %v1008_v57 = vrot.slane %v3787_v56, 1  ;;  %v3789_v31 = vpop.eup %3788 }
 0x55b   :  { %v1011_v25 = vsub.f32 %v4301_v20, %v1007_v24  ;;  %v3791_v35 = vpop.eup %3790 }
 0x55c   :  { %v1012_v28 = vsub.f32 %v4303_v21, %v1008_v57 }
 0x55d   :  { %v1015_v30 = vrot.slane %v1011_v25, 7 }
 0x55e   :  { %v1016_v33 = vrot.slane %v1012_v28, 7 }
 0x55f   :  { %v1019_v36 = vmul.f32 %v3789_v31, %v1015_v30 }
 0x560   :  { %v1020_v37 = vmul.f32 %v3791_v35, %v1016_v33 }
 0x561   :  { %v4336_v38 = vadd.f32 %v3785_v23, %v1019_v36 }
 0x562   :  { %v4338_v39 = vadd.f32 %v3787_v56, %v1020_v37 }
 0x563   :  { %v1023_v12 = vpack.c.bf16 %v4336_v38, %v4336_v38 }
 0x564   :  { %v1024_v41 = vpack.c.bf16 %v4338_v39, %v4338_v39 }
 0x565   :  { %v1027_v44 = vunpack.c.l.b16 %v1023_v12 }
 0x566   :  { %v1028_v20 = vunpack.c.l.b16 %v1024_v41 }
 0x567   :  { %v1029_v45 = vrot.slane %v1027_v44, 4 }
 0x568   :  { %v1030_v21 = vrot.slane %v1028_v20, 3 }
 0x56a   :  { %v1031_v47 = vsel %vm368_vm3, %v1030_v21, %v1029_v45 }
 0x56b   :  { %v4345_v34 = vpack.c.b16 %v1031_v47, %v1031_v47 }
 0x56d   :  { %3288 = vmatmul.mubr.msk.bf16.vlgmr.msra.gmra.mxu0 %vm229_vm2, %v4345_v34  ;;  %3497 = vmatmul.mubr.msk.bf16.vlgmr.msra.gmra.mxu1 %vm229_vm2, %v4345_v34 }
 0x56e   :  { %1211 = vmatpush1.bf16.msra.mxu0 %v4124_v8  ;;  %3501 = vmatpush3.bf16.msra.mxu1 %v4140_v13 }
 0x56f   :  { %1212 = vmatprep.subr.bf16.mxu0 %v4127_v9  ;;  %3502 = vmatprep.subr.bf16.mxu1 %v4073_v1 }
 0x570   :  { %1230 = vmatprep.mubr.bf16.mxu0 %v4072_v0  ;;  %3504 = vmatprep.mubr.msk.bf16.mxu1 %vm4074_vm0, %v4073_v1 }
 0x572   :  { %1213 = vmatpush1.bf16.msra.mxu0 %v4130_v11  ;;  %3503 = vmatpush3.bf16.msra.mxu1 %v4145_v15 }
 0x573   :  { %1372 = vmatprep.subr.bf16.mxu0 %v4122_v7  ;;  %3508 = vmatprep.subr.bf16.mxu1 %v4073_v1 }
 0x62d   :  { %v1070_v8 = vpop.f32.mrf.mxu0  ;;  %v1111_v48 = vpop.f32.mrf.mxu1 }
 0x62e   :  { %v1118_v13 = vrot.slane %v1070_v8, 3  ;;  %v1119_v32 = vrot.slane %v1070_v8, 4  ;;  %v1155_v16 = vadd.f32 %v1111_v48, %v4185_v58 }
 0x62f   :  { %v1072_v9 = vpop.f32.mrf.mxu0  ;;  %v3498_v51 = vpop.f32.mrf.mxu1 }
 0x630   :  { %v1122_v52 = vadd.f32 %v1118_v13, %v4172_v26  ;;  %v1123_v53 = vadd.f32 %v1119_v32, %v4174_v29  ;;  %v1137_v7 = vrot.slane %v1072_v9, 3  ;;  %v1138_v61 = vrot.slane %v1072_v9, 4 }
 0x631   :  { %v1074_v54 = vpop.f32.mrf.mxu0  ;;  %v1114_v55 = vpop.f32.mrf.mxu1  ;;  %v1157_v19 = vrot.slane %v1155_v16, 3  ;;  %v1158_v22 = vrot.slane %v1155_v16, 4 }
 0x632   :  { %v3290_v59 = vmul.f32 -1.442695, %v1122_v52  ;;  %v3291_v11 = vmul.f32 -1.442695, %v1123_v53  ;;  %v1141_v43 = vadd.f32 %v1137_v7, %v4178_v46  ;;  %v1142_v42 = vadd.f32 %v1138_v61, %v4180_v49  ;;  %v3940_v7 = vld [vmem:[#allocation5 + $0x20] ss:$12 sps:$4 sm:$0xff]  }
 0x633   :  { %v1075_v60 = vpop.f32.mrf.mxu0  ;;  %v3499_v15 = vpop.f32.mrf.mxu1  ;;  %v4391_v61 = vld [vmem:[#allocation5 + $0x64] ss:$12 sps:$4 sm:$0xff]  }
 0x634   :  { %3792 = vpow2.f32 %v3290_v59  ;;  %v3292_v10 = vmul.f32 -1.442695, %v1141_v43  ;;  %v3293_v14 = vmul.f32 -1.442695, %v1142_v42  ;;  %v3936_v59 = vld [vmem:[#allocation5 + $0x30] ss:$12 sps:$4 sm:$0xff]  }
 0x635   :  { %3794 = vpow2.f32 %v3291_v11  ;;  %v3937_v11 = vld [vmem:[#allocation5 + $0x38] ss:$12 sps:$4 sm:$0xff]   ;;  %v3938_v60 = vld [vmem:[#allocation5 + $0x1c] ss:$12 sps:$4 sm:$0xff]  }
 0x636   :  { %v3939_v15 = vld [vmem:[#allocation5 + $0x18] ss:$12 sps:$4 sm:$0xff]  }
 0x641   :  { %v3793_v62 = vpop.eup %3792 }
 0x642   :  { %v3795_v63 = vpop.eup %3794  ;;  %v1130_v3 = vadd.f32 1.0, %v3793_v62 }
 0x643   :  { %v1131_v6 = vadd.f32 1.0, %v3795_v63 }
 0x644   :  { %3796 = vrcp.f32 %v1130_v3 }
 0x645   :  { %3798 = vrcp.f32 %v1131_v6 }
 0x646   :  { %3800 = vpow2.f32 %v3292_v10 }
 0x647   :  { %3802 = vpow2.f32 %v3293_v14 }
 0x651   :  { %v3797_v18 = vpop.eup %3796 }
 0x652   :  { %v3799_v23 = vpop.eup %3798  ;;  %v1161_v56 = vmul.f32 %v3797_v18, %v1157_v19 }
 0x653   :  { %v1162_v24 = vmul.f32 %v3799_v23, %v1158_v22  ;;  %v3801_v25 = vpop.eup %3800 }
 0x654   :  { %v1163_v57 = vadd.f32 %v1161_v56, %v4188_v4  ;;  %v3803_v30 = vpop.eup %3802  ;;  %v1149_v31 = vadd.f32 1.0, %v3801_v25 }
 0x655   :  { %v1164_v28 = vadd.f32 %v1162_v24, %v4190_v5  ;;  %v1150_v33 = vadd.f32 1.0, %v3803_v30 }
 0x656   :  { %3804 = vtanh.f32 %v1163_v57 }
 0x657   :  { %3806 = vtanh.f32 %v1164_v28 }
 0x658   :  { %3808 = vrcp.f32 %v1149_v31 }
 0x659   :  { %3810 = vrcp.f32 %v1150_v33 }
 0x663   :  { %v3805_v35 = vpop.eup %3804 }
 0x664   :  { %v3807_v36 = vpop.eup %3806  ;;  %v1169_v37 = vrot.slane %v3805_v35, 1 }
 0x665   :  { %v1170_v12 = vrot.slane %v3807_v36, 1  ;;  %v3809_v45 = vpop.eup %3808 }
 0x666   :  { %v1173_v41 = vsub.f32 %v4336_v38, %v1169_v37  ;;  %v3811_v47 = vpop.eup %3810 }
 0x667   :  { %v1174_v44 = vsub.f32 %v4338_v39, %v1170_v12 }
 0x668   :  { %v1177_v20 = vrot.slane %v1173_v41, 7 }
 0x669   :  { %v1178_v21 = vrot.slane %v1174_v44, 7 }
 0x66a   :  { %v1181_v8 = vmul.f32 %v3809_v45, %v1177_v20 }
 0x66b   :  { %v1182_v48 = vmul.f32 %v3811_v47, %v1178_v21 }
 0x66c   :  { %v4371_v13 = vadd.f32 %v3805_v35, %v1181_v8 }
 0x66d   :  { %v4373_v32 = vadd.f32 %v3807_v36, %v1182_v48 }
 0x66e   :  { %v1185_v9 = vpack.c.bf16 %v4371_v13, %v4371_v13 }
 0x66f   :  { %v1186_v51 = vpack.c.bf16 %v4373_v32, %v4373_v32 }
 0x670   :  { %v1189_v52 = vunpack.c.l.b16 %v1185_v9 }
 0x671   :  { %v1190_v38 = vunpack.c.l.b16 %v1186_v51 }
 0x672   :  { %v1191_v53 = vrot.slane %v1189_v52, 5 }
 0x673   :  { %v1192_v39 = vrot.slane %v1190_v38, 4 }
 0x675   :  { %v1193_v54 = vsel %vm368_vm3, %v1192_v39, %v1191_v53 }
 0x676   :  { %v4380_v55 = vpack.c.b16 %v1193_v54, %v1193_v54 }
 0x678   :  { %3294 = vmatmul.mubr.msk.bf16.vlgmr.msra.gmra.mxu0 %vm229_vm2, %v4380_v55  ;;  %3505 = vmatmul.mubr.msk.bf16.vlgmr.msra.gmra.mxu1 %vm229_vm2, %v4380_v55 }
 0x679   :  { %1373 = vmatpush1.bf16.msra.mxu0 %v3936_v59  ;;  %3509 = vmatpush3.bf16.msra.mxu1 %v3937_v11 }
 0x67a   :  { %1374 = vmatprep.subr.bf16.mxu0 %v3938_v60  ;;  %3510 = vmatprep.subr.bf16.mxu1 %v4073_v1 }
 0x67b   :  { %1392 = vmatprep.mubr.bf16.mxu0 %v4072_v0  ;;  %3512 = vmatprep.mubr.msk.bf16.mxu1 %vm4074_vm0, %v4073_v1 }
 0x67d   :  { %1375 = vmatpush1.bf16.msra.mxu0 %v3939_v15  ;;  %3511 = vmatpush3.bf16.msra.mxu1 %v3940_v7 }
 0x67e   :  { %3516 = vmatprep.subr.bf16.mxu1 %v4073_v1  ;;  %1592 = vmatprep.subr.bf16.mxu0 %v4391_v61 }
 0x738   :  { %v1232_v43 = vpop.f32.mrf.mxu0  ;;  %v1273_v62 = vpop.f32.mrf.mxu1 }
 0x739   :  { %v1280_v42 = vrot.slane %v1232_v43, 2  ;;  %v1281_v63 = vrot.slane %v1232_v43, 3  ;;  %v1317_v12 = vadd.f32 %v1273_v62, %v4185_v58 }
 0x73a   :  { %v1234_v3 = vpop.f32.mrf.mxu0  ;;  %v3506_v6 = vpop.f32.mrf.mxu1 }
 0x73b   :  { %v1284_v10 = vadd.f32 %v1280_v42, %v4172_v26  ;;  %v1285_v14 = vadd.f32 %v1281_v63, %v4174_v29  ;;  %v1299_v24 = vrot.slane %v1234_v3, 2  ;;  %v1300_v57 = vrot.slane %v1234_v3, 3 }
 0x73c   :  { %v1236_v16 = vpop.f32.mrf.mxu0  ;;  %v1276_v19 = vpop.f32.mrf.mxu1  ;;  %v1319_v41 = vrot.slane %v1317_v12, 2  ;;  %v1320_v20 = vrot.slane %v1317_v12, 3 }
 0x73d   :  { %v3296_v18 = vmul.f32 -1.442695, %v1284_v10  ;;  %v3297_v22 = vmul.f32 -1.442695, %v1285_v14  ;;  %v1303_v25 = vadd.f32 %v1299_v24, %v4178_v46  ;;  %v1304_v30 = vadd.f32 %v1300_v57, %v4180_v49  ;;  %v4418_v24 = vld [vmem:[#allocation5 + $0x4c] ss:$12 sps:$4 sm:$0xff]  }
 0x73e   :  { %v1237_v23 = vpop.f32.mrf.mxu0  ;;  %v3507_v56 = vpop.f32.mrf.mxu1  ;;  %v4426_v57 = vld [vmem:[#allocation5 + $0x48] ss:$12 sps:$4 sm:$0xff]  }
 0x73f   :  { %3812 = vpow2.f32 %v3296_v18  ;;  %v3298_v36 = vmul.f32 -1.442695, %v1303_v25  ;;  %v3299_v37 = vmul.f32 -1.442695, %v1304_v30  ;;  %v4414_v23 = vld [vmem:[#allocation5 + $0x68] ss:$12 sps:$4 sm:$0xff]  }
 0x740   :  { %3814 = vpow2.f32 %v3297_v22  ;;  %v4412_v22 = vld [vmem:[#allocation5 + $0x60] ss:$12 sps:$4 sm:$0xff]   ;;  %v4428_v25 = vld [vmem:[#allocation5 + $0x50] ss:$12 sps:$4 sm:$0xff]  }
 0x741   :  { %v4439_v30 = vld [vmem:[#allocation5 + $0x90] ss:$12 sps:$4 sm:$0xff]  }
 0x74c   :  { %v3813_v28 = vpop.eup %3812 }
 0x74d   :  { %v3815_v31 = vpop.eup %3814  ;;  %v1292_v33 = vadd.f32 1.0, %v3813_v28  ;;  %v4432_v28 = vld [vmem:[#allocation5 + $0x94] ss:$12 sps:$4 sm:$0xff]  }
 0x74e   :  { %v1293_v35 = vadd.f32 1.0, %v3815_v31  ;;  %v4441_v31 = vld [vmem:[#allocation5 + $0x98] ss:$12 sps:$4 sm:$0xff]  }
 0x74f   :  { %3816 = vrcp.f32 %v1292_v33  ;;  %v4445_v33 = vld [vmem:[#allocation5 + $0x7c] ss:$12 sps:$4 sm:$0xff]  }
 0x750   :  { %3818 = vrcp.f32 %v1293_v35  ;;  %v4453_v35 = vld [vmem:[#allocation5 + $0x78] ss:$12 sps:$4 sm:$0xff]  }
 0x751   :  { %3820 = vpow2.f32 %v3298_v36  ;;  %v4455_v36 = vld [vmem:[#allocation5 + $0x80] ss:$12 sps:$4 sm:$0xff]  }
 0x752   :  { %3822 = vpow2.f32 %v3299_v37  ;;  %v4460_v37 = vld [vmem:[%s4812_s1 + $0x2] sm:$0x3]  ;;  %s4075_s1 = smov [#allocation9]  }
 0x753   :  { %s3230_s13 = sshll.u32 %s4075_s1, 4  ;;  %s3231_s13 = int_to_ptr.vmem [resolvable:$true] %s3230_s13 }
 0x754   :  { %s4017_s14 = scalar_lea.vmem %s3231_s13, 64  ;;  %p4022_p2 = scmp.lt.s32.totalorder %s3231_s13, %s3231_s13 }
 0x755   :  { %p4018_p1 = scmp.ne.s32.totalorder %s3231_s13, %s4017_s14  ;;  %p4023_p3 = scmp.lt.s32.totalorder %s4017_s14, %s4017_s14 }
 0x757   :  { %p4024_p4 = por %p4023_p3, %p4022_p2 }
 0x759   :  { %p4025_p5 = pnand %p4024_p4, %p4018_p1 }
 0x75c   :  { %v3817_v44 = vpop.eup %3816 }
 0x75d   :  { %v3819_v45 = vpop.eup %3818  ;;  %v1323_v21 = vmul.f32 %v3817_v44, %v1319_v41 }
 0x75e   :  { %v1324_v47 = vmul.f32 %v3819_v45, %v1320_v20  ;;  %v3821_v48 = vpop.eup %3820 }
 0x75f   :  { %v1325_v8 = vadd.f32 %v1323_v21, %v4188_v4  ;;  %v3823_v51 = vpop.eup %3822  ;;  %v1311_v52 = vadd.f32 1.0, %v3821_v48 }
 0x760   :  { %v1326_v9 = vadd.f32 %v1324_v47, %v4190_v5  ;;  %v1312_v38 = vadd.f32 1.0, %v3823_v51 }
 0x761   :  { %3824 = vtanh.f32 %v1325_v8 }
 0x762   :  { %3826 = vtanh.f32 %v1326_v9 }
 0x763   :  { %3828 = vrcp.f32 %v1311_v52 }
 0x764   :  { %3830 = vrcp.f32 %v1312_v38 }
 0x76e   :  { %v3825_v53 = vpop.eup %3824 }
 0x76f   :  { %v3827_v39 = vpop.eup %3826  ;;  %v1331_v54 = vrot.slane %v3825_v53, 1 }
 0x770   :  { %v1332_v59 = vrot.slane %v3827_v39, 1  ;;  %v3829_v7 = vpop.eup %3828 }
 0x771   :  { %v1335_v11 = vsub.f32 %v4371_v13, %v1331_v54  ;;  %v3831_v62 = vpop.eup %3830 }
 0x772   :  { %v1336_v60 = vsub.f32 %v4373_v32, %v1332_v59 }
 0x773   :  { %v1339_v15 = vrot.slane %v1335_v11, 7 }
 0x774   :  { %v1340_v43 = vrot.slane %v1336_v60, 7  ;;  %v4510_v60 = vld [vmem:[#allocation7] sm:$0xff] }
 0x775   :  { %v1343_v42 = vmul.f32 %v3829_v7, %v1339_v15 }
 0x776   :  { %v1344_v63 = vmul.f32 %v3831_v62, %v1340_v43 }
 0x777   :  { %v4403_v3 = vadd.f32 %v3825_v53, %v1343_v42  ;;  %v4506_v53 = vsub.s32 1, %v4169_v17 }
 0x778   :  { %v4405_v6 = vadd.f32 %v3827_v39, %v1344_v63 }
 0x779   :  { %v1347_v10 = vpack.c.bf16 %v4403_v3, %v4403_v3 }
 0x77a   :  { %v1348_v14 = vpack.c.bf16 %v4405_v6, %v4405_v6 }
 0x77b   :  { %v1351_v16 = vunpack.c.l.b16 %v1347_v10 }
 0x77c   :  { %v1352_v13 = vunpack.c.l.b16 %v1348_v14 }
 0x77d   :  { %v1353_v19 = vrot.slane %v1351_v16, 6 }
 0x77e   :  { %v1354_v32 = vrot.slane %v1352_v13, 5 }
 0x780   :  { %v1355_v18 = vsel %vm368_vm3, %v1354_v32, %v1353_v19 }
 0x781   :  { %v4416_v56 = vpack.c.b16 %v1355_v18, %v1355_v18 }
 0x783   :  { %3300 = vmatmul.mubr.msk.bf16.vlgmr.msra.gmra.mxu0 %vm229_vm2, %v4416_v56  ;;  %3513 = vmatmul.mubr.msk.bf16.vlgmr.msra.gmra.mxu1 %vm229_vm2, %v4416_v56 }
 0x784   :  { %1593 = vmatpush1.bf16.msra.mxu0 %v4412_v22  ;;  %3517 = vmatpush3.bf16.msra.mxu1 %v4414_v23 }
 0x785   :  { %1594 = vmatprep.subr.bf16.mxu0 %v4418_v24  ;;  %3518 = vmatprep.subr.bf16.mxu1 %v4073_v1 }
 0x786   :  { %1612 = vmatprep.mubr.bf16.mxu0 %v4072_v0  ;;  %3520 = vmatprep.mubr.msk.bf16.mxu1 %vm4074_vm0, %v4073_v1 }
 0x788   :  { %1595 = vmatpush1.bf16.msra.mxu0 %v4426_v57  ;;  %3519 = vmatpush3.bf16.msra.mxu1 %v4428_v25 }
 0x789   :  { %1709 = vmatprep.subr.bf16.mxu0 %v4432_v28  ;;  %3524 = vmatprep.subr.bf16.mxu1 %v4073_v1 }
 0x78b   :  { %3313 = vmatmul.mubr.msk.bf16.vlgmr.msra.gmra.mxu0 %vm229_vm2, %v4205_v40  ;;  %3521 = vmatmul.mubr.msk.bf16.vlgmr.msra.gmra.mxu1 %vm229_vm2, %v4205_v40  ;;  %v1661_v40 = vpack.c.bf16 %v4460_v37, %v4460_v37 }
 0x78c   :  { %1710 = vmatpush1.bf16.msra.mxu0 %v4439_v30  ;;  %3525 = vmatpush3.bf16.msra.mxu1 %v4441_v31 }
 0x78d   :  { %1711 = vmatprep.subr.bf16.mxu0 %v4445_v33  ;;  %3526 = vmatprep.subr.bf16.mxu1 %v4073_v1 }
 0x78e   :  { %1729 = vmatprep.mubr.bf16.mxu0 %v4072_v0  ;;  %3528 = vmatprep.mubr.msk.bf16.mxu1 %vm4074_vm0, %v4073_v1 }
 0x790   :  { %1712 = vmatpush1.bf16.msra.mxu0 %v4453_v35  ;;  %3527 = vmatpush3.bf16.msra.mxu1 %v4455_v36 }
 0x791   :  { %1815 = vmatprep.subr.bf16.mxu0 %v4391_v61  ;;  %3532 = vmatprep.subr.bf16.mxu1 %v4073_v1 }
 0x793   :  { %3321 = vmatmul.mubr.msk.bf16.vlgmr.msra.gmra.mxu0 %vm229_vm2, %v1661_v40  ;;  %3529 = vmatmul.mubr.msk.bf16.vlgmr.msra.gmra.mxu1 %vm229_vm2, %v1661_v40 }
 0x794   :  { %1816 = vmatpush1.bf16.msra.mxu0 %v4412_v22  ;;  %3533 = vmatpush3.bf16.msra.mxu1 %v4414_v23 }
 0x795   :  { %1817 = vmatprep.subr.bf16.mxu0 %v4418_v24  ;;  %3534 = vmatprep.subr.bf16.mxu1 %v4073_v1 }
 0x796   :  { %1835 = vmatprep.mubr.bf16.mxu0 %v4072_v0  ;;  %3536 = vmatprep.mubr.msk.bf16.mxu1 %vm4074_vm0, %v4073_v1 }
 0x798   :  { %1818 = vmatpush1.bf16.msra.mxu0 %v4426_v57  ;;  %3535 = vmatpush3.bf16.msra.mxu1 %v4428_v25 }
 0x799   :  { %1900 = vmatprep.subr.bf16.mxu0 %v4432_v28  ;;  %3540 = vmatprep.subr.bf16.mxu1 %v4073_v1 }
 0x79b   :  { %3325 = vmatmul.mubr.msk.bf16.vlgmr.msra.gmra.mxu0 %vm229_vm2, %v4240_v50  ;;  %3537 = vmatmul.mubr.msk.bf16.vlgmr.msra.gmra.mxu1 %vm229_vm2, %v4240_v50 }
 0x79c   :  { %1901 = vmatpush1.bf16.msra.mxu0 %v4439_v30  ;;  %3541 = vmatpush3.bf16.msra.mxu1 %v4441_v31 }
 0x79d   :  { %1902 = vmatprep.subr.bf16.mxu0 %v4445_v33  ;;  %3542 = vmatprep.subr.bf16.mxu1 %v4073_v1 }
 0x79e   :  { %1920 = vmatprep.mubr.bf16.mxu0 %v4072_v0  ;;  %3544 = vmatprep.mubr.msk.bf16.mxu1 %vm4074_vm0, %v4073_v1 }
 0x7a0   :  { %1903 = vmatpush1.bf16.msra.mxu0 %v4453_v35  ;;  %3543 = vmatpush3.bf16.msra.mxu1 %v4455_v36 }
 0x7a1   :  { %2002 = vmatprep.subr.bf16.mxu0 %v4391_v61  ;;  %3548 = vmatprep.subr.bf16.mxu1 %v4073_v1 }
 0x843   :  { %v1394_v50 = vpop.f32.mrf.mxu0  ;;  %v4501_v12 = vpop.f32.mrf.mxu1 }
 0x844   :  { %v1442_v41 = vrot.slane %v1394_v50, 1  ;;  %v1443_v44 = vrot.slane %v1394_v50, 2 }
 0x845   :  { %v1396_v20 = vpop.f32.mrf.mxu0  ;;  %v3514_v45 = vpop.f32.mrf.mxu1 }
 0x846   :  { %v1446_v21 = vadd.f32 %v1442_v41, %v4172_v26  ;;  %v1447_v47 = vadd.f32 %v1443_v44, %v4174_v29  ;;  %v4514_v26 = vrot.slane %v4510_v60, %v4506_v53  ;;  %v1461_v62 = vrot.slane %v1396_v20, 1 }
 0x847   :  { %v1398_v8 = vpop.f32.mrf.mxu0  ;;  %v1438_v48 = vpop.f32.mrf.mxu1  ;;  %v1462_v63 = vrot.slane %v1396_v20, 2 }
 0x848   :  { %v3302_v9 = vmul.f32 -1.442695, %v1446_v21  ;;  %v3303_v51 = vmul.f32 -1.442695, %v1447_v47  ;;  %v1465_v32 = vadd.f32 %v1461_v62, %v4178_v46  ;;  %v3942_v47 = vld [vmem:[#allocation7 + $0x8] sm:$0xff] }
 0x849   :  { %v1399_v52 = vpop.f32.mrf.mxu0  ;;  %v3515_v38 = vpop.f32.mrf.mxu1  ;;  %v1466_v50 = vadd.f32 %v1462_v63, %v4180_v49  ;;  %v4520_v8 = vrot.slane %v3942_v47, %v4506_v53 }
 0x84a   :  { %3832 = vpow2.f32 %v3302_v9 }
 0x84b   :  { %3834 = vpow2.f32 %v3303_v51  ;;  %v1614_v39 = vpop.f32.mrf.mxu0  ;;  %v4508_v54 = vpop.f32.mrf.mxu1  ;;  %v3304_v51 = vmul.f32 -1.442695, %v1465_v32  ;;  %v3305_v46 = vmul.f32 -1.442695, %v1466_v50 }
 0x84c   :  { %v1615_v42 = vadd.f32 %v1614_v39, %v4514_v26 }
 0x84d   :  { %v1616_v59 = vpop.f32.mrf.mxu0  ;;  %v3522_v11 = vpop.f32.mrf.mxu1 }
 0x84e   :  { %v1617_v49 = vadd.f32 %v1616_v59, %v4520_v8 }
 0x84f   :  { %v1618_v29 = vpop.f32.mrf.mxu0  ;;  %v1658_v15 = vpop.f32.mrf.mxu1 }
 0x851   :  { %v1619_v7 = vpop.f32.mrf.mxu0  ;;  %v3523_v43 = vpop.f32.mrf.mxu1 }
 0x853   :  { %v1731_v10 = vpop.f32.mrf.mxu0  ;;  %v1772_v14 = vpop.f32.mrf.mxu1 }
 0x854   :  { %v1778_v16 = vadd.f32 %v1731_v10, %v1615_v42  ;;  %v1479_v42 = vadd.f32 %v4501_v12, %v4185_v58 }
 0x855   :  { %v1733_v13 = vpop.f32.mrf.mxu0  ;;  %v3530_v19 = vpop.f32.mrf.mxu1 }
 0x856   :  { %v3323_v18 = vmul.f32 -1.442695, %v1778_v16  ;;  %v1785_v29 = vadd.f32 %v1733_v13, %v1617_v49  ;;  %v1481_v16 = vrot.slane %v1479_v42, 1  ;;  %v1794_v13 = vsub.s32 3, %v4169_v17 }
 0x857   :  { %v3833_v40 = vpop.eup %3832  ;;  %v1735_v41 = vpop.f32.mrf.mxu0 }
 0x858   :  { %v1775_v44 = vpop.f32.mrf.mxu1  ;;  %v3835_v45 = vpop.eup %3834  ;;  %v1454_v21 = vadd.f32 1.0, %v3833_v40  ;;  %3836 = vpow2.f32 %v3323_v18  ;;  %v3324_v63 = vmul.f32 -1.442695, %v1785_v29  ;;  %v1482_v18 = vrot.slane %v1479_v42, 2 }
 0x859   :  { %v1455_v20 = vadd.f32 1.0, %v3835_v45  ;;  %v1736_v48 = vpop.f32.mrf.mxu0  ;;  %v4535_v58 = vrot.slane %v4510_v60, %v1794_v13 }
 0x85a   :  { %v3531_v9 = vpop.f32.mrf.mxu1  ;;  %3838 = vrcp.f32 %v1454_v21 }
 0x85b   :  { %3840 = vrcp.f32 %v1455_v20  ;;  %v4522_v52 = vpop.f32.mrf.mxu0  ;;  %v3943_v20 = vld [vmem:[#allocation7 + $0x10] sm:$0xff]  ;;  %v1796_v9 = vadd.f32 %v4535_v58, %v1772_v14 }
 0x85c   :  { %v4524_v38 = vpop.f32.mrf.mxu1  ;;  %3842 = vpow2.f32 %v3304_v51  ;;  %v4538_v48 = vrot.slane %v3943_v20, %v4506_v53 }
 0x85d   :  { %v4527_v39 = vpop.f32.mrf.mxu0  ;;  %3844 = vpow2.f32 %v3305_v46 }
 0x85e   :  { %v3538_v11 = vpop.f32.mrf.mxu1  ;;  %3846 = vpow2.f32 %v3324_v63 }
 0x85f   :  { %v1841_v15 = vpop.f32.mrf.mxu0 }
 0x860   :  { %v1881_v7 = vpop.f32.mrf.mxu1 }
 0x861   :  { %v1842_v43 = vpop.f32.mrf.mxu0 }
 0x862   :  { %v3539_v62 = vpop.f32.mrf.mxu1 }
 0x865   :  { %v3837_v10 = vpop.eup %3836 }
 0x866   :  { %v1782_v19 = vadd.f32 1.0, %v3837_v10 }
 0x867   :  { %v3839_v32 = vpop.eup %3838 }
 0x868   :  { %v3841_v59 = vpop.eup %3840  ;;  %v1485_v40 = vmul.f32 %v3839_v32, %v1481_v16  ;;  %3848 = vrcp.f32 %v1782_v19 }
 0x869   :  { %v1486_v50 = vmul.f32 %v3841_v59, %v1482_v18  ;;  %v3843_v44 = vpop.eup %3842 }
 0x86a   :  { %v1487_v41 = vadd.f32 %v1485_v40, %v4188_v4  ;;  %v3845_v21 = vpop.eup %3844  ;;  %v1473_v12 = vadd.f32 1.0, %v3843_v44 }
 0x86b   :  { %v1488_v45 = vadd.f32 %v1486_v50, %v4190_v5  ;;  %v1474_v47 = vadd.f32 1.0, %v3845_v21  ;;  %v3847_v4 = vpop.eup %3846  ;;  %v1656_v5 = vadd.f32 %v4508_v54, %v4538_v48 }
 0x86c   :  { %3850 = vtanh.f32 %v1487_v41  ;;  %v1789_v11 = vadd.f32 1.0, %v3847_v4 }
 0x86d   :  { %3852 = vtanh.f32 %v1488_v45 }
 0x86e   :  { %3854 = vrcp.f32 %v1473_v12 }
 0x86f   :  { %3856 = vrcp.f32 %v1474_v47 }
 0x875   :  { %v3849_v51 = vpop.eup %3848 }
 0x876   :  { %v1797_v46 = vmul.f32 %v3849_v51, %v1796_v9 }
 0x878   :  { %v1798_v49 = vadd.f32 %v1797_v46, %v1656_v5 }
 0x879   :  { %v3851_v60 = vpop.eup %3850 }
 0x87a   :  { %v3853_v29 = vpop.eup %3852  ;;  %v1493_v15 = vrot.slane %v3851_v60, 1  ;;  %3858 = vtanh.f32 %v1798_v49 }
 0x87b   :  { %v1494_v7 = vrot.slane %v3853_v29, 1  ;;  %3860 = vrcp.f32 %v1789_v11  ;;  %v3855_v62 = vpop.eup %3854 }
 0x87c   :  { %v1497_v53 = vsub.f32 %v4403_v3, %v1493_v15  ;;  %v3857_v63 = vpop.eup %3856 }
 0x87d   :  { %v1498_v43 = vsub.f32 %v4405_v6, %v1494_v7  ;;  %v1840_v7 = vadd.f32 %v4527_v39, %v4520_v8  ;;  %v1879_v39 = vadd.f32 %v4524_v38, %v4538_v48 }
 0x87e   :  { %v1501_v14 = vrot.slane %v1497_v53, 7 }
 0x87f   :  { %v1502_v42 = vrot.slane %v1498_v43, 7 }
 0x880   :  { %v1505_v10 = vmul.f32 %v3855_v62, %v1501_v14 }
 0x881   :  { %v1506_v16 = vmul.f32 %v3857_v63, %v1502_v42 }
 0x882   :  { %v1507_v54 = vadd.f32 %v3851_v60, %v1505_v10 }
 0x883   :  { %v1508_v19 = vadd.f32 %v3853_v29, %v1506_v16 }
 0x884   :  { %v2925_v32 = vpack.c.bf16 %v1507_v54, %v1507_v54  ;;  %1515 = vst.msk [vmem:[#allocation9 - $0x7] sm:$0x80] %vm1514_vm4, %v1507_v54 }
 0x885   :  { %v2926_v18 = vpack.c.bf16 %v1508_v19, %v1508_v19  ;;  %v1511_v59 = vrot.slane %v1508_v19, 7 }
 0x886   :  { %v2929_v40 = vunpack.c.l.b16 %v2925_v32 }
 0x887   :  { %v3859_v50 = vpop.eup %3858  ;;  %v2930_v3 = vunpack.c.l.b16 %v2926_v18  ;;  %1517 = vst.msk [vmem:[#allocation9 + $0x1] sm:$0x1] %vm1516_vm5, %v1511_v59 }
 0x888   :  { %v1800_v6 = vsub.f32 %v4460_v37, %v3859_v50  ;;  %v2931_v13 = vrot.slane %v2929_v40, 7  ;;  %v3861_v41 = vpop.eup %3860 }
 0x889   :  { %v2932_v44 = vrot.slane %v2930_v3, 6 }
 0x88a   :  { %v1801_v45 = vmul.f32 %v3861_v41, %v1800_v6 }
 0x88b   :  { %v4547_v21 = vsel %vm368_vm3, %v2932_v44, %v2931_v13 }
 0x88c   :  { %v4549_v12 = vadd.f32 %v3859_v50, %v1801_v45 }
 0x88e   :  { %v1884_v47 = vpack.c.bf16 %v4549_v12, %v4549_v12 }
 0x890   :  { %3327 = vmatmul.mubr.msk.bf16.vlgmr.msra.gmra.mxu0 %vm229_vm2, %v1884_v47  ;;  %3545 = vmatmul.mubr.msk.bf16.vlgmr.msra.gmra.mxu1 %vm229_vm2, %v1884_v47 }
 0x891   :  { %2003 = vmatpush1.bf16.msra.mxu0 %v4412_v22  ;;  %3549 = vmatpush3.bf16.msra.mxu1 %v4414_v23 }
 0x892   :  { %2004 = vmatprep.subr.bf16.mxu0 %v4418_v24  ;;  %3550 = vmatprep.subr.bf16.mxu1 %v4073_v1 }
 0x893   :  { %2022 = vmatprep.mubr.bf16.mxu0 %v4072_v0  ;;  %3552 = vmatprep.mubr.msk.bf16.mxu1 %vm4074_vm0, %v4073_v1 }
 0x895   :  { %2005 = vmatpush1.bf16.msra.mxu0 %v4426_v57  ;;  %3551 = vmatpush3.bf16.msra.mxu1 %v4428_v25 }
 0x896   :  { %2087 = vmatprep.subr.bf16.mxu0 %v4432_v28  ;;  %3556 = vmatprep.subr.bf16.mxu1 %v4073_v1 }
 0x898   :  { %3331 = vmatmul.mubr.msk.bf16.vlgmr.msra.gmra.mxu0 %vm229_vm2, %v4275_v2  ;;  %3553 = vmatmul.mubr.msk.bf16.vlgmr.msra.gmra.mxu1 %vm229_vm2, %v4275_v2  ;;  %v1838_v2 = vadd.f32 %v4522_v52, %v4514_v26 }
 0x899   :  { %2088 = vmatpush1.bf16.msra.mxu0 %v4439_v30  ;;  %3557 = vmatpush3.bf16.msra.mxu1 %v4441_v31 }
 0x89a   :  { %2089 = vmatprep.subr.bf16.mxu0 %v4445_v33  ;;  %3558 = vmatprep.subr.bf16.mxu1 %v4073_v1 }
 0x89b   :  { %2107 = vmatprep.mubr.bf16.mxu0 %v4072_v0  ;;  %3560 = vmatprep.mubr.msk.bf16.mxu1 %vm4074_vm0, %v4073_v1 }
 0x89d   :  { %2090 = vmatpush1.bf16.msra.mxu0 %v4453_v35  ;;  %3559 = vmatpush3.bf16.msra.mxu1 %v4455_v36 }
 0x89e   :  { %2189 = vmatprep.subr.bf16.mxu0 %v4391_v61  ;;  %3564 = vmatprep.subr.bf16.mxu1 %v4073_v1 }
 0x950   :  { %v1922_v37 = vpop.f32.mrf.mxu0  ;;  %v1963_v20 = vpop.f32.mrf.mxu1 }
 0x951   :  { %v1969_v9 = vadd.f32 %v1922_v37, %v1838_v2  ;;  %v1983_v32 = vadd.f32 %v1963_v20, %v4535_v58 }
 0x952   :  { %v1924_v4 = vpop.f32.mrf.mxu0  ;;  %v3546_v51 = vpop.f32.mrf.mxu1 }
 0x953   :  { %v3329_v5 = vmul.f32 -1.442695, %v1969_v9  ;;  %v1976_v43 = vadd.f32 %v1924_v4, %v1840_v7 }
 0x954   :  { %v1926_v46 = vpop.f32.mrf.mxu0  ;;  %v1966_v49 = vpop.f32.mrf.mxu1 }
 0x955   :  { %3862 = vpow2.f32 %v3329_v5  ;;  %v3330_v10 = vmul.f32 -1.442695, %v1976_v43 }
 0x956   :  { %v1927_v11 = vpop.f32.mrf.mxu0  ;;  %v3547_v60 = vpop.f32.mrf.mxu1 }
 0x957   :  { %3864 = vpow2.f32 %v3330_v10 }
 0x958   :  { %v2024_v29 = vpop.f32.mrf.mxu0  ;;  %v4583_v15 = vpop.f32.mrf.mxu1 }
 0x95a   :  { %v4587_v53 = vpop.f32.mrf.mxu0  ;;  %v3554_v52 = vpop.f32.mrf.mxu1 }
 0x95b   :  { %v2027_v11 = vadd.f32 %v4587_v53, %v4520_v8  ;;  %v2066_v53 = vadd.f32 %v4583_v15, %v4538_v48 }
 0x95c   :  { %v2028_v14 = vpop.f32.mrf.mxu0  ;;  %v2068_v62 = vpop.f32.mrf.mxu1 }
 0x95e   :  { %v2029_v42 = vpop.f32.mrf.mxu0  ;;  %v3555_v63 = vpop.f32.mrf.mxu1 }
 0x962   :  { %v3863_v16 = vpop.eup %3862 }
 0x963   :  { %v1973_v54 = vadd.f32 1.0, %v3863_v16 }
 0x964   :  { %v3865_v19 = vpop.eup %3864 }
 0x965   :  { %3866 = vrcp.f32 %v1973_v54  ;;  %v1980_v50 = vadd.f32 1.0, %v3865_v19 }
 0x972   :  { %v3867_v18 = vpop.eup %3866 }
 0x973   :  { %v1984_v59 = vmul.f32 %v3867_v18, %v1983_v32 }
 0x975   :  { %v1985_v40 = vadd.f32 %v1984_v59, %v1879_v39 }
 0x977   :  { %3868 = vtanh.f32 %v1985_v40 }
 0x978   :  { %3870 = vrcp.f32 %v1980_v50 }
 0x984   :  { %v3869_v3 = vpop.eup %3868 }
 0x985   :  { %v1987_v6 = vsub.f32 %v4549_v12, %v3869_v3  ;;  %v3871_v13 = vpop.eup %3870 }
 0x987   :  { %v1988_v41 = vmul.f32 %v3871_v13, %v1987_v6 }
 0x989   :  { %v4593_v44 = vadd.f32 %v3869_v3, %v1988_v41 }
 0x98b   :  { %v2071_v45 = vpack.c.bf16 %v4593_v44, %v4593_v44 }
 0x98d   :  { %3333 = vmatmul.mubr.msk.bf16.vlgmr.msra.gmra.mxu0 %vm229_vm2, %v2071_v45  ;;  %3561 = vmatmul.mubr.msk.bf16.vlgmr.msra.gmra.mxu1 %vm229_vm2, %v2071_v45 }
 0x98e   :  { %2190 = vmatpush1.bf16.msra.mxu0 %v4412_v22  ;;  %3565 = vmatpush3.bf16.msra.mxu1 %v4414_v23 }
 0x98f   :  { %2191 = vmatprep.subr.bf16.mxu0 %v4418_v24  ;;  %3566 = vmatprep.subr.bf16.mxu1 %v4073_v1 }
 0x990   :  { %2209 = vmatprep.mubr.bf16.mxu0 %v4072_v0  ;;  %3568 = vmatprep.mubr.msk.bf16.mxu1 %vm4074_vm0, %v4073_v1 }
 0x992   :  { %2192 = vmatpush1.bf16.msra.mxu0 %v4426_v57  ;;  %3567 = vmatpush3.bf16.msra.mxu1 %v4428_v25 }
 0x993   :  { %2274 = vmatprep.subr.bf16.mxu0 %v4432_v28  ;;  %3572 = vmatprep.subr.bf16.mxu1 %v4073_v1 }
 0x995   :  { %3337 = vmatmul.mubr.msk.bf16.vlgmr.msra.gmra.mxu0 %vm229_vm2, %v4310_v27  ;;  %3569 = vmatmul.mubr.msk.bf16.vlgmr.msra.gmra.mxu1 %vm229_vm2, %v4310_v27  ;;  %v2025_v27 = vadd.f32 %v2024_v29, %v4514_v26 }
 0x996   :  { %2275 = vmatpush1.bf16.msra.mxu0 %v4439_v30  ;;  %3573 = vmatpush3.bf16.msra.mxu1 %v4441_v31 }
 0x997   :  { %2276 = vmatprep.subr.bf16.mxu0 %v4445_v33  ;;  %3574 = vmatprep.subr.bf16.mxu1 %v4073_v1 }
 0x998   :  { %2294 = vmatprep.mubr.bf16.mxu0 %v4072_v0  ;;  %3576 = vmatprep.mubr.msk.bf16.mxu1 %vm4074_vm0, %v4073_v1 }
 0x99a   :  { %2277 = vmatpush1.bf16.msra.mxu0 %v4453_v35  ;;  %3575 = vmatpush3.bf16.msra.mxu1 %v4455_v36 }
 0x99b   :  { %2376 = vmatprep.subr.bf16.mxu0 %v4391_v61  ;;  %3580 = vmatprep.subr.bf16.mxu1 %v4073_v1 }
 0xa4d   :  { %v2109_v38 = vpop.f32.mrf.mxu0  ;;  %v2150_v12 = vpop.f32.mrf.mxu1 }
 0xa4e   :  { %v2156_v47 = vadd.f32 %v2109_v38, %v2025_v27  ;;  %v2170_v54 = vadd.f32 %v2150_v12, %v4535_v58 }
 0xa4f   :  { %v2111_v2 = vpop.f32.mrf.mxu0  ;;  %v3562_v37 = vpop.f32.mrf.mxu1 }
 0xa50   :  { %v3335_v20 = vmul.f32 -1.442695, %v2156_v47  ;;  %v2163_v7 = vadd.f32 %v2111_v2, %v2027_v11 }
 0xa51   :  { %v2113_v9 = vpop.f32.mrf.mxu0  ;;  %v2153_v4 = vpop.f32.mrf.mxu1 }
 0xa52   :  { %3872 = vpow2.f32 %v3335_v20  ;;  %v3336_v42 = vmul.f32 -1.442695, %v2163_v7 }
 0xa53   :  { %v2114_v51 = vpop.f32.mrf.mxu0  ;;  %v3563_v5 = vpop.f32.mrf.mxu1 }
 0xa54   :  { %3874 = vpow2.f32 %v3336_v42 }
 0xa55   :  { %v2211_v46 = vpop.f32.mrf.mxu0  ;;  %v4626_v49 = vpop.f32.mrf.mxu1 }
 0xa57   :  { %v4630_v60 = vpop.f32.mrf.mxu0  ;;  %v3570_v29 = vpop.f32.mrf.mxu1 }
 0xa58   :  { %v2214_v4 = vadd.f32 %v4630_v60, %v4520_v8  ;;  %v2253_v60 = vadd.f32 %v4626_v49, %v4538_v48 }
 0xa59   :  { %v2215_v52 = vpop.f32.mrf.mxu0  ;;  %v2255_v43 = vpop.f32.mrf.mxu1 }
 0xa5b   :  { %v2216_v14 = vpop.f32.mrf.mxu0  ;;  %v3571_v62 = vpop.f32.mrf.mxu1 }
 0xa5f   :  { %v3873_v63 = vpop.eup %3872 }
 0xa60   :  { %v2160_v10 = vadd.f32 1.0, %v3873_v63 }
 0xa61   :  { %v3875_v16 = vpop.eup %3874 }
 0xa62   :  { %3876 = vrcp.f32 %v2160_v10  ;;  %v2167_v39 = vadd.f32 1.0, %v3875_v16 }
 0xa6f   :  { %v3877_v19 = vpop.eup %3876 }
 0xa70   :  { %v2171_v32 = vmul.f32 %v3877_v19, %v2170_v54 }
 0xa72   :  { %v2172_v18 = vadd.f32 %v2171_v32, %v2066_v53 }
 0xa74   :  { %3878 = vtanh.f32 %v2172_v18 }
 0xa75   :  { %3880 = vrcp.f32 %v2167_v39 }
 0xa81   :  { %v3879_v59 = vpop.eup %3878 }
 0xa82   :  { %v2174_v40 = vsub.f32 %v4593_v44, %v3879_v59  ;;  %v3881_v50 = vpop.eup %3880 }
 0xa84   :  { %v2175_v3 = vmul.f32 %v3881_v50, %v2174_v40 }
 0xa86   :  { %v4636_v6 = vadd.f32 %v3879_v59, %v2175_v3 }
 0xa88   :  { %v2258_v13 = vpack.c.bf16 %v4636_v6, %v4636_v6 }
 0xa8a   :  { %3339 = vmatmul.mubr.msk.bf16.vlgmr.msra.gmra.mxu0 %vm229_vm2, %v2258_v13  ;;  %3577 = vmatmul.mubr.msk.bf16.vlgmr.msra.gmra.mxu1 %vm229_vm2, %v2258_v13 }
 0xa8b   :  { %2377 = vmatpush1.bf16.msra.mxu0 %v4412_v22  ;;  %3581 = vmatpush3.bf16.msra.mxu1 %v4414_v23 }
 0xa8c   :  { %2378 = vmatprep.subr.bf16.mxu0 %v4418_v24  ;;  %3582 = vmatprep.subr.bf16.mxu1 %v4073_v1 }
 0xa8d   :  { %2396 = vmatprep.mubr.bf16.mxu0 %v4072_v0  ;;  %3584 = vmatprep.mubr.msk.bf16.mxu1 %vm4074_vm0, %v4073_v1 }
 0xa8f   :  { %2379 = vmatpush1.bf16.msra.mxu0 %v4426_v57  ;;  %3583 = vmatpush3.bf16.msra.mxu1 %v4428_v25 }
 0xa90   :  { %2461 = vmatprep.subr.bf16.mxu0 %v4432_v28  ;;  %3588 = vmatprep.subr.bf16.mxu1 %v4073_v1 }
 0xa92   :  { %3343 = vmatmul.mubr.msk.bf16.vlgmr.msra.gmra.mxu0 %vm229_vm2, %v4345_v34  ;;  %3585 = vmatmul.mubr.msk.bf16.vlgmr.msra.gmra.mxu1 %vm229_vm2, %v4345_v34  ;;  %v2212_v34 = vadd.f32 %v2211_v46, %v4514_v26 }
 0xa93   :  { %2462 = vmatpush1.bf16.msra.mxu0 %v4439_v30  ;;  %3589 = vmatpush3.bf16.msra.mxu1 %v4441_v31 }
 0xa94   :  { %2463 = vmatprep.subr.bf16.mxu0 %v4445_v33  ;;  %3590 = vmatprep.subr.bf16.mxu1 %v4073_v1 }
 0xa95   :  { %2481 = vmatprep.mubr.bf16.mxu0 %v4072_v0  ;;  %3592 = vmatprep.mubr.msk.bf16.mxu1 %vm4074_vm0, %v4073_v1 }
 0xa97   :  { %2464 = vmatpush1.bf16.msra.mxu0 %v4453_v35  ;;  %3591 = vmatpush3.bf16.msra.mxu1 %v4455_v36 }
 0xa98   :  { %2563 = vmatprep.subr.bf16.mxu0 %v4391_v61  ;;  %3596 = vmatprep.subr.bf16.mxu1 %v4073_v1 }
 0xb4a   :  { %v2296_v15 = vpop.f32.mrf.mxu0  ;;  %v2337_v41 = vpop.f32.mrf.mxu1 }
 0xb4b   :  { %v2343_v44 = vadd.f32 %v2296_v15, %v2212_v34  ;;  %v2357_v63 = vadd.f32 %v2337_v41, %v4535_v58 }
 0xb4c   :  { %v2298_v45 = vpop.f32.mrf.mxu0  ;;  %v3578_v27 = vpop.f32.mrf.mxu1 }
 0xb4d   :  { %v3341_v38 = vmul.f32 -1.442695, %v2343_v44  ;;  %v2350_v46 = vadd.f32 %v2298_v45, %v2214_v4 }
 0xb4e   :  { %v2300_v12 = vpop.f32.mrf.mxu0  ;;  %v2340_v47 = vpop.f32.mrf.mxu1 }
 0xb4f   :  { %3882 = vpow2.f32 %v3341_v38  ;;  %v3342_v43 = vmul.f32 -1.442695, %v2350_v46 }
 0xb50   :  { %v2301_v2 = vpop.f32.mrf.mxu0  ;;  %v3579_v37 = vpop.f32.mrf.mxu1 }
 0xb51   :  { %3884 = vpow2.f32 %v3342_v43 }
 0xb52   :  { %v2398_v20 = vpop.f32.mrf.mxu0  ;;  %v4669_v9 = vpop.f32.mrf.mxu1 }
 0xb54   :  { %v4673_v51 = vpop.f32.mrf.mxu0  ;;  %v3586_v5 = vpop.f32.mrf.mxu1 }
 0xb56   :  { %v2402_v11 = vpop.f32.mrf.mxu0  ;;  %v2442_v29 = vpop.f32.mrf.mxu1 }
 0xb58   :  { %v2403_v7 = vpop.f32.mrf.mxu0  ;;  %v3587_v52 = vpop.f32.mrf.mxu1 }
 0xb5c   :  { %v3883_v14 = vpop.eup %3882 }
 0xb5d   :  { %v2347_v62 = vadd.f32 1.0, %v3883_v14 }
 0xb5e   :  { %v3885_v42 = vpop.eup %3884 }
 0xb5f   :  { %3886 = vrcp.f32 %v2347_v62  ;;  %v2354_v19 = vadd.f32 1.0, %v3885_v42 }
 0xb6c   :  { %v3887_v10 = vpop.eup %3886 }
 0xb6d   :  { %v2358_v16 = vmul.f32 %v3887_v10, %v2357_v63 }
 0xb6f   :  { %v2359_v54 = vadd.f32 %v2358_v16, %v2253_v60 }
 0xb71   :  { %3888 = vtanh.f32 %v2359_v54 }
 0xb72   :  { %3890 = vrcp.f32 %v2354_v19 }
 0xb7e   :  { %v3889_v53 = vpop.eup %3888 }
 0xb7f   :  { %v2361_v32 = vsub.f32 %v4636_v6, %v3889_v53  ;;  %v3891_v18 = vpop.eup %3890 }
 0xb81   :  { %v2362_v39 = vmul.f32 %v3891_v18, %v2361_v32 }
 0xb83   :  { %v4679_v59 = vadd.f32 %v3889_v53, %v2362_v39 }
 0xb85   :  { %v2445_v40 = vpack.c.bf16 %v4679_v59, %v4679_v59 }
 0xb87   :  { %3345 = vmatmul.mubr.msk.bf16.vlgmr.msra.gmra.mxu0 %vm229_vm2, %v2445_v40  ;;  %3593 = vmatmul.mubr.msk.bf16.vlgmr.msra.gmra.mxu1 %vm229_vm2, %v2445_v40 }
 0xb88   :  { %2564 = vmatpush1.bf16.msra.mxu0 %v4412_v22  ;;  %3597 = vmatpush3.bf16.msra.mxu1 %v4414_v23 }
 0xb89   :  { %2565 = vmatprep.subr.bf16.mxu0 %v4418_v24  ;;  %3598 = vmatprep.subr.bf16.mxu1 %v4073_v1 }
 0xb8a   :  { %2583 = vmatprep.mubr.bf16.mxu0 %v4072_v0  ;;  %3600 = vmatprep.mubr.msk.bf16.mxu1 %vm4074_vm0, %v4073_v1 }
 0xb8c   :  { %2566 = vmatpush1.bf16.msra.mxu0 %v4426_v57  ;;  %3599 = vmatpush3.bf16.msra.mxu1 %v4428_v25 }
 0xb8d   :  { %2648 = vmatprep.subr.bf16.mxu0 %v4432_v28  ;;  %3604 = vmatprep.subr.bf16.mxu1 %v4073_v1 }
 0xb8f   :  { %3349 = vmatmul.mubr.msk.bf16.vlgmr.msra.gmra.mxu0 %vm229_vm2, %v4380_v55  ;;  %3601 = vmatmul.mubr.msk.bf16.vlgmr.msra.gmra.mxu1 %vm229_vm2, %v4380_v55  ;;  %v2399_v55 = vadd.f32 %v2398_v20, %v4514_v26 }
 0xb90   :  { %2649 = vmatpush1.bf16.msra.mxu0 %v4439_v30  ;;  %3605 = vmatpush3.bf16.msra.mxu1 %v4441_v31 }
 0xb91   :  { %2650 = vmatprep.subr.bf16.mxu0 %v4445_v33  ;;  %3606 = vmatprep.subr.bf16.mxu1 %v4073_v1 }
 0xb92   :  { %2668 = vmatprep.mubr.bf16.mxu0 %v4072_v0  ;;  %3608 = vmatprep.mubr.msk.bf16.mxu1 %vm4074_vm0, %v4073_v1 }
 0xb94   :  { %2651 = vmatpush1.bf16.msra.mxu0 %v4453_v35  ;;  %3607 = vmatpush3.bf16.msra.mxu1 %v4455_v36 }
 0xb95   :  { %2750 = vmatprep.subr.bf16.mxu0 %v4391_v61  ;;  %3612 = vmatprep.subr.bf16.mxu1 %v4073_v1  ;;  %v2401_v61 = vadd.f32 %v4673_v51, %v4520_v8  ;;  %v2440_v51 = vadd.f32 %v4669_v9, %v4538_v48 }
 0xc47   :  { %v2483_v49 = vpop.f32.mrf.mxu0  ;;  %v2524_v50 = vpop.f32.mrf.mxu1 }
 0xc48   :  { %v2530_v3 = vadd.f32 %v2483_v49, %v2399_v55  ;;  %v2544_v52 = vadd.f32 %v2524_v50, %v4535_v58 }
 0xc49   :  { %v2485_v6 = vpop.f32.mrf.mxu0  ;;  %v3594_v13 = vpop.f32.mrf.mxu1 }
 0xc4a   :  { %v3347_v34 = vmul.f32 -1.442695, %v2530_v3  ;;  %v2537_v2 = vadd.f32 %v2485_v6, %v2401_v61 }
 0xc4b   :  { %v2487_v15 = vpop.f32.mrf.mxu0  ;;  %v2527_v41 = vpop.f32.mrf.mxu1 }
 0xc4c   :  { %3892 = vpow2.f32 %v3347_v34  ;;  %v3348_v46 = vmul.f32 -1.442695, %v2537_v2 }
 0xc4d   :  { %v2488_v44 = vpop.f32.mrf.mxu0  ;;  %v3595_v45 = vpop.f32.mrf.mxu1 }
 0xc4e   :  { %3894 = vpow2.f32 %v3348_v46  ;;  %v3947_v46 = vld [vmem:[#allocation5 + $0x4c] ss:$12 sps:$4 sm:$0xff]  }
 0xc4f   :  { %v2585_v27 = vpop.f32.mrf.mxu0  ;;  %v4712_v38 = vpop.f32.mrf.mxu1 }
 0xc50   :  { %v2627_v44 = vadd.f32 %v4712_v38, %v4538_v48  ;;  %v3945_v38 = vld [vmem:[#allocation5 + $0x60] ss:$12 sps:$4 sm:$0xff]  }
 0xc51   :  { %v4716_v12 = vpop.f32.mrf.mxu0  ;;  %v3602_v47 = vpop.f32.mrf.mxu1 }
 0xc52   :  { %v2588_v32 = vadd.f32 %v4716_v12, %v4520_v8 }
 0xc53   :  { %v2589_v37 = vpop.f32.mrf.mxu0  ;;  %v2629_v20 = vpop.f32.mrf.mxu1 }
 0xc55   :  { %v2590_v4 = vpop.f32.mrf.mxu0  ;;  %v3603_v5 = vpop.f32.mrf.mxu1 }
 0xc56   :  { %v3946_v5 = vld [vmem:[#allocation5 + $0x68] ss:$12 sps:$4 sm:$0xff]  }
 0xc59   :  { %v3893_v11 = vpop.eup %3892 }
 0xc5a   :  { %v2534_v29 = vadd.f32 1.0, %v3893_v11  ;;  %v3948_v11 = vld [vmem:[#allocation5 + $0x48] ss:$12 sps:$4 sm:$0xff]  }
 0xc5b   :  { %v3895_v7 = vpop.eup %3894 }
 0xc5c   :  { %3896 = vrcp.f32 %v2534_v29  ;;  %v2541_v42 = vadd.f32 1.0, %v3895_v7  ;;  %v3949_v29 = vld [vmem:[#allocation5 + $0x50] ss:$12 sps:$4 sm:$0xff]   ;;  %v2934_v7 = vpack.c.b16 %v4547_v21, %v4547_v21  ;;  %v3954_v21 = vld [vmem:[#allocation5 + $0x78] ss:$12 sps:$4 sm:$0xff]  }
 0xc69   :  { %v3897_v43 = vpop.eup %3896 }
 0xc6a   :  { %v2545_v14 = vmul.f32 %v3897_v43, %v2544_v52  ;;  %v3950_v52 = vld [vmem:[#allocation5 + $0x94] ss:$12 sps:$4 sm:$0xff]   ;;  %v3951_v43 = vld [vmem:[#allocation5 + $0x90] ss:$12 sps:$4 sm:$0xff]  }
 0xc6c   :  { %v2546_v62 = vadd.f32 %v2545_v14, %v2440_v51  ;;  %v3952_v51 = vld [vmem:[#allocation5 + $0x98] ss:$12 sps:$4 sm:$0xff]   ;;  %v3953_v14 = vld [vmem:[#allocation5 + $0x7c] ss:$12 sps:$4 sm:$0xff]  }
 0xc6e   :  { %3898 = vtanh.f32 %v2546_v62  ;;  %v3955_v62 = vld [vmem:[#allocation5 + $0x80] ss:$12 sps:$4 sm:$0xff]  }
 0xc6f   :  { %3900 = vrcp.f32 %v2541_v42 }
 0xc7b   :  { %v3899_v63 = vpop.eup %3898 }
 0xc7c   :  { %v2548_v10 = vsub.f32 %v4679_v59, %v3899_v63  ;;  %v3901_v60 = vpop.eup %3900 }
 0xc7e   :  { %v2549_v16 = vmul.f32 %v3901_v60, %v2548_v10 }
 0xc80   :  { %v4722_v54 = vadd.f32 %v3899_v63, %v2549_v16 }
 0xc82   :  { %v2632_v19 = vpack.c.bf16 %v4722_v54, %v4722_v54 }
 0xc84   :  { %3351 = vmatmul.mubr.msk.bf16.vlgmr.msra.gmra.mxu0 %vm229_vm2, %v2632_v19  ;;  %3609 = vmatmul.mubr.msk.bf16.vlgmr.msra.gmra.mxu1 %vm229_vm2, %v2632_v19 }
 0xc85   :  { %2751 = vmatpush1.bf16.msra.mxu0 %v4412_v22  ;;  %3613 = vmatpush3.bf16.msra.mxu1 %v4414_v23  ;;  %v3944_v22 = vld [vmem:[#allocation5 + $0x64] ss:$12 sps:$4 sm:$0xff]   ;;  %v2586_v23 = vadd.f32 %v2585_v27, %v4514_v26 }
 0xc86   :  { %2752 = vmatprep.subr.bf16.mxu0 %v4418_v24  ;;  %3614 = vmatprep.subr.bf16.mxu1 %v4073_v1 }
 0xc87   :  { %2770 = vmatprep.mubr.bf16.mxu0 %v4072_v0  ;;  %3616 = vmatprep.mubr.msk.bf16.mxu1 %vm4074_vm0, %v4073_v1 }
 0xc89   :  { %2753 = vmatpush1.bf16.msra.mxu0 %v4426_v57  ;;  %3615 = vmatpush3.bf16.msra.mxu1 %v4428_v25 }
 0xc8a   :  { %2835 = vmatprep.subr.bf16.mxu0 %v4432_v28  ;;  %3620 = vmatprep.subr.bf16.mxu1 %v4073_v1 }
 0xc8c   :  { %3355 = vmatmul.mubr.msk.bf16.vlgmr.msra.gmra.mxu0 %vm229_vm2, %v4416_v56  ;;  %3617 = vmatmul.mubr.msk.bf16.vlgmr.msra.gmra.mxu1 %vm229_vm2, %v4416_v56 }
 0xc8d   :  { %2836 = vmatpush1.bf16.msra.mxu0 %v4439_v30  ;;  %3621 = vmatpush3.bf16.msra.mxu1 %v4441_v31 }
 0xc8e   :  { %2837 = vmatprep.subr.bf16.mxu0 %v4445_v33  ;;  %3622 = vmatprep.subr.bf16.mxu1 %v4073_v1 }
 0xc8f   :  { %2855 = vmatprep.mubr.bf16.mxu0 %v4072_v0  ;;  %3624 = vmatprep.mubr.msk.bf16.mxu1 %vm4074_vm0, %v4073_v1 }
 0xc91   :  { %2838 = vmatpush1.bf16.msra.mxu0 %v4453_v35  ;;  %3623 = vmatpush3.bf16.msra.mxu1 %v4455_v36 }
 0xc92   :  { %2950 = vmatprep.subr.bf16.mxu0 %v3944_v22  ;;  %3628 = vmatprep.subr.bf16.mxu1 %v4073_v1 }
 0xd44   :  { %v2670_v56 = vpop.f32.mrf.mxu0  ;;  %v2711_v24 = vpop.f32.mrf.mxu1 }
 0xd45   :  { %v2717_v57 = vadd.f32 %v2670_v56, %v2586_v23  ;;  %v2731_v15 = vadd.f32 %v2711_v24, %v4535_v58 }
 0xd46   :  { %v2672_v25 = vpop.f32.mrf.mxu0  ;;  %v3610_v28 = vpop.f32.mrf.mxu1 }
 0xd47   :  { %v3353_v30 = vmul.f32 -1.442695, %v2717_v57  ;;  %v2724_v59 = vadd.f32 %v2672_v25, %v2588_v32 }
 0xd48   :  { %v2674_v31 = vpop.f32.mrf.mxu0  ;;  %v2714_v33 = vpop.f32.mrf.mxu1 }
 0xd49   :  { %3902 = vpow2.f32 %v3353_v30  ;;  %v3354_v3 = vmul.f32 -1.442695, %v2724_v59 }
 0xd4a   :  { %v2675_v9 = vpop.f32.mrf.mxu0  ;;  %v3611_v53 = vpop.f32.mrf.mxu1 }
 0xd4b   :  { %3904 = vpow2.f32 %v3354_v3 }
 0xd4c   :  { %v4754_v35 = vpop.f32.mrf.mxu0  ;;  %v4756_v36 = vpop.f32.mrf.mxu1 }
 0xd4d   :  { %v2773_v42 = vadd.f32 %v4754_v35, %v4514_v26 }
 0xd4e   :  { %v4760_v18 = vpop.f32.mrf.mxu0  ;;  %v3618_v39 = vpop.f32.mrf.mxu1 }
 0xd4f   :  { %v2775_v25 = vadd.f32 %v4760_v18, %v4520_v8 }
 0xd50   :  { %v2776_v40 = vpop.f32.mrf.mxu0  ;;  %v2816_v55 = vpop.f32.mrf.mxu1 }
 0xd52   :  { %v2777_v49 = vpop.f32.mrf.mxu0  ;;  %v3619_v50 = vpop.f32.mrf.mxu1 }
 0xd53   :  { %v2814_v50 = vadd.f32 %v4756_v36, %v4538_v48  ;;  %v3688_v36 = vld [vmem:[#allocation5 + $0xc4] ss:$12 sps:$4 sm:$0xff]  }
 0xd56   :  { %v3903_v6 = vpop.eup %3902 }
 0xd57   :  { %v2721_v13 = vadd.f32 1.0, %v3903_v6 }
 0xd58   :  { %v3905_v34 = vpop.eup %3904 }
 0xd59   :  { %3906 = vrcp.f32 %v2721_v13  ;;  %v2728_v61 = vadd.f32 1.0, %v3905_v34 }
 0xd66   :  { %v3907_v41 = vpop.eup %3906 }
 0xd67   :  { %v2732_v45 = vmul.f32 %v3907_v41, %v2731_v15 }
 0xd69   :  { %v2733_v27 = vadd.f32 %v2732_v45, %v2627_v44 }
 0xd6b   :  { %3908 = vtanh.f32 %v2733_v27  ;;  %v3686_v27 = vld [vmem:[#allocation5 + $0xc0] ss:$12 sps:$4 sm:$0xff]  }
 0xd6c   :  { %3910 = vrcp.f32 %v2728_v61  ;;  %v3691_v61 = vld [vmem:[#allocation5 + $0xac] ss:$12 sps:$4 sm:$0xff]  }
 0xd78   :  { %v3909_v12 = vpop.eup %3908 }
 0xd79   :  { %v2735_v47 = vsub.f32 %v4722_v54, %v3909_v12  ;;  %v3911_v2 = vpop.eup %3910 }
 0xd7b   :  { %v2736_v37 = vmul.f32 %v3911_v2, %v2735_v47 }
 0xd7d   :  { %v4766_v20 = vadd.f32 %v3909_v12, %v2736_v37  ;;  %v3689_v12 = vld [vmem:[#allocation5 + $0xa8] ss:$12 sps:$4 sm:$0xff]  }
 0xd7f   :  { %v2819_v4 = vpack.c.bf16 %v4766_v20, %v4766_v20 }
 0xd81   :  { %3357 = vmatmul.mubr.msk.bf16.vlgmr.msra.gmra.mxu0 %vm229_vm2, %v2819_v4  ;;  %3625 = vmatmul.mubr.msk.bf16.vlgmr.msra.gmra.mxu1 %vm229_vm2, %v2819_v4 }
 0xd82   :  { %2951 = vmatpush1.bf16.msra.mxu0 %v3945_v38  ;;  %3629 = vmatpush3.bf16.msra.mxu1 %v3946_v5 }
 0xd83   :  { %2952 = vmatprep.subr.bf16.mxu0 %v3947_v46  ;;  %3630 = vmatprep.subr.bf16.mxu1 %v4073_v1 }
 0xd84   :  { %2970 = vmatprep.mubr.bf16.mxu0 %v4072_v0  ;;  %3632 = vmatprep.mubr.msk.bf16.mxu1 %vm4074_vm0, %v4073_v1 }
 0xd86   :  { %2953 = vmatpush1.bf16.msra.mxu0 %v3948_v11  ;;  %3631 = vmatpush3.bf16.msra.mxu1 %v3949_v29 }
 0xd87   :  { %3035 = vmatprep.subr.bf16.mxu0 %v3950_v52  ;;  %3636 = vmatprep.subr.bf16.mxu1 %v4073_v1 }
 0xd89   :  { %3361 = vmatmul.mubr.msk.bf16.vlgmr.msra.gmra.mxu0 %vm229_vm2, %v2934_v7  ;;  %3633 = vmatmul.mubr.msk.bf16.vlgmr.msra.gmra.mxu1 %vm229_vm2, %v2934_v7 }
 0xd8a   :  { %3036 = vmatpush1.bf16.msra.mxu0 %v3951_v43  ;;  %3637 = vmatpush3.bf16.msra.mxu1 %v3952_v51 }
 0xd8b   :  { %3037 = vmatprep.subr.bf16.mxu0 %v3953_v14  ;;  %3638 = vmatprep.subr.bf16.mxu1 %v4073_v1 }
 0xd8c   :  { %3055 = vmatprep.mubr.bf16.mxu0 %v4072_v0  ;;  %3640 = vmatprep.mubr.msk.bf16.mxu1 %vm4074_vm0, %v4073_v1 }
 0xd8e   :  { %3038 = vmatpush1.bf16.msra.mxu0 %v3954_v21  ;;  %3639 = vmatpush3.bf16.msra.mxu1 %v3955_v62 }
 0xd8f   :  { %3168 = vmatprep.subr.bf16.mxu0 %v3688_v36 }
 0xe41   :  { %v2857_v63 = vpop.f32.mrf.mxu0  ;;  %v2898_v10 = vpop.f32.mrf.mxu1 }
 0xe42   :  { %v2904_v60 = vadd.f32 %v2857_v63, %v2773_v42  ;;  %v2918_v55 = vadd.f32 %v2898_v10, %v4535_v58 }
 0xe43   :  { %v2859_v16 = vpop.f32.mrf.mxu0  ;;  %v3626_v54 = vpop.f32.mrf.mxu1 }
 0xe44   :  { %v3359_v19 = vmul.f32 -1.442695, %v2904_v60  ;;  %v2911_v31 = vadd.f32 %v2859_v16, %v2775_v25 }
 0xe45   :  { %v2861_v22 = vpop.f32.mrf.mxu0  ;;  %v2901_v23 = vpop.f32.mrf.mxu1 }
 0xe46   :  { %3912 = vpow2.f32 %v3359_v19  ;;  %v3360_v32 = vmul.f32 -1.442695, %v2911_v31 }
 0xe47   :  { %v2862_v56 = vpop.f32.mrf.mxu0  ;;  %v3627_v24 = vpop.f32.mrf.mxu1 }
 0xe48   :  { %3914 = vpow2.f32 %v3360_v32  ;;  %v3956_v56 = vld [vmem:[#allocation7] sm:$0xff] }
 0xe49   :  { %v2972_v57 = vpop.f32.mrf.mxu0  ;;  %v3013_v1 = vpop.f32.mrf.mxu1 }
 0xe4a   :  { %v2973_v47 = vadd.f32 %v2972_v57, %v4514_v26  ;;  %v3014_v42 = vadd.f32 %v3013_v1, %v4538_v48 }
 0xe4b   :  { %v2974_v28 = vpop.f32.mrf.mxu0  ;;  %v3634_v30 = vpop.f32.mrf.mxu1 }
 0xe4c   :  { %v2975_v7 = vadd.f32 %v2974_v28, %v4520_v8 }
 0xe4d   :  { %v2976_v33 = vpop.f32.mrf.mxu0  ;;  %v3016_v9 = vpop.f32.mrf.mxu1 }
 0xe4f   :  { %v2977_v53 = vpop.f32.mrf.mxu0  ;;  %v3635_v35 = vpop.f32.mrf.mxu1 }
 0xe53   :  { %v3913_v39 = vpop.eup %3912 }
 0xe54   :  { %v2908_v59 = vadd.f32 1.0, %v3913_v39 }
 0xe55   :  { %v3915_v40 = vpop.eup %3914 }
 0xe56   :  { %3916 = vrcp.f32 %v2908_v59  ;;  %v2915_v6 = vadd.f32 1.0, %v3915_v40 }
 0xe63   :  { %v3917_v49 = vpop.eup %3916 }
 0xe64   :  { %v2919_v18 = vmul.f32 %v3917_v49, %v2918_v55 }
 0xe66   :  { %v2920_v3 = vadd.f32 %v2919_v18, %v2814_v50 }
 0xe68   :  { %3918 = vtanh.f32 %v2920_v3 }
 0xe69   :  { %3920 = vrcp.f32 %v2915_v6 }
 0xe75   :  { %v3919_v13 = vpop.eup %3918 }
 0xe76   :  { %v2922_v34 = vsub.f32 %v4766_v20, %v3919_v13  ;;  %v3921_v15 = vpop.eup %3920 }
 0xe78   :  { %v2923_v41 = vmul.f32 %v3921_v15, %v2922_v34 }
 0xe7a   :  { %v2924_v44 = vadd.f32 %v3919_v13, %v2923_v41 }
 0xe7c   :  { %v3019_v45 = vpack.c.bf16 %v2924_v44, %v2924_v44 }
 0xe7e   :  { %3363 = vmatmul.mubr.msk.bf16.vlgmr.msra.gmra.mxu0 %vm229_vm2, %v3019_v45  ;;  %3641 = vmatmul.mubr.msk.bf16.vlgmr.msra.gmra.mxu1 %vm229_vm2, %v3019_v45 }
 0xe7f   :  { %3188 = vmatprep.mubr.bf16.mxu0 %v4072_v0  ;;  %3169 = vmatpush1.bf16.msra.mxu0 %v3686_v27 }
 0xe80   :  { %3170 = vmatprep.subr.bf16.mxu0 %v3691_v61 }
 0xe83   :  { %3171 = vmatpush1.bf16.msra.mxu0 %v3689_v12 }
 0xf3e   :  { %v3057_v2 = vpop.f32.mrf.mxu0  ;;  %v3098_v37 = vpop.f32.mrf.mxu1 }
 0xf3f   :  { %v3104_v20 = vadd.f32 %v3057_v2, %v2973_v47  ;;  %v3118_v21 = vadd.f32 %v3098_v37, %v4535_v58  ;;  %v3198_v58 = vsub.s32 4, %v4169_v17 }
 0xf40   :  { %v3059_v4 = vpop.f32.mrf.mxu0  ;;  %v3642_v38 = vpop.f32.mrf.mxu1 }
 0xf41   :  { %v3365_v5 = vmul.f32 -1.442695, %v3104_v20  ;;  %v3111_v52 = vadd.f32 %v3059_v4, %v2975_v7  ;;  %v3199_v24 = vrot.slane %v3956_v56, %v3198_v58 }
 0xf42   :  { %v3061_v46 = vpop.f32.mrf.mxu0  ;;  %v3101_v11 = vpop.f32.mrf.mxu1 }
 0xf43   :  { %3922 = vpow2.f32 %v3365_v5  ;;  %v3366_v43 = vmul.f32 -1.442695, %v3111_v52 }
 0xf44   :  { %v3062_v0 = vpop.f32.mrf.mxu0  ;;  %v3643_v29 = vpop.f32.mrf.mxu1 }
 0xf45   :  { %3924 = vpow2.f32 %v3366_v43 }
 0xf50   :  { %v3923_v51 = vpop.eup %3922 }
 0xf51   :  { %v3108_v14 = vadd.f32 1.0, %v3923_v51 }
 0xf52   :  { %v3925_v26 = vpop.eup %3924 }
 0xf53   :  { %3926 = vrcp.f32 %v3108_v14  ;;  %v3115_v60 = vadd.f32 1.0, %v3925_v26 }
 0xf60   :  { %v3927_v62 = vpop.eup %3926 }
 0xf61   :  { %v3119_v63 = vmul.f32 %v3927_v62, %v3118_v21 }
 0xf63   :  { %v3120_v10 = vadd.f32 %v3119_v63, %v3014_v42 }
 0xf65   :  { %3928 = vtanh.f32 %v3120_v10 }
 0xf66   :  { %3930 = vrcp.f32 %v3115_v60 }
 0xf72   :  { %v3929_v16 = vpop.eup %3928 }
 0xf73   :  { %v3122_v54 = vsub.f32 %v2924_v44, %v3929_v16  ;;  %v3931_v8 = vpop.eup %3930 }
 0xf75   :  { %v3123_v19 = vmul.f32 %v3931_v8, %v3122_v54 }
 0xf77   :  { %v3124_v22 = vadd.f32 %v3929_v16, %v3123_v19 }
 0xf79   :  { %v3132_v23 = vpack.c.bf16 %v3124_v22, %v3124_v22  ;;  %3127 = vst.msk [vmem:[#allocation9 + $0x2] sm:$0x3] %vm3126_vm6, %v3124_v22 }
 0xf7b   :  { %3371 = vmatmul.mubr.msk.bf16.vlgmr.msra.gmra.mxu0 %vm229_vm2, %v3132_v23 }
0x103b   :  { %v3190_v48 = vpop.f32.mrf.mxu0 }
0x103c   :  { %v3200_v57 = vadd.f32 %v3199_v24, %v3190_v48 }
0x103d   :  { %v3192_v1 = vpop.f32.mrf.mxu0 }
0x103e   :  { %v3201_v25 = vmax.f32 %v3200_v57, 0.0 }
0x103f   :  { %v3193_v28 = vpop.f32.mrf.mxu0 }
0x1040   :  { %v3203_v30 = vsel %vm3202_vm7, %v3201_v25, -inf }
0x1041   :  { %3204 = vmax.xlane.f32.xlu0 %v3203_v30  ;;  %v3194_v31 = vpop.f32.mrf.mxu0 }
0x10ca   :  { %v3205_v33 = vpop.xlane.xlu0 %3204 }
0x10cb   :  { %v3206_v9 = vsub.f32 %v3201_v25, %v3205_v33 }
0x10cd   :  { %v3207_v53 = vmul.f32 1.442695, %v3206_v9 }
0x10cf   :  { %3932 = vpow2.f32 %v3207_v53 }
0x10dc   :  { %v3933_v35 = vpop.eup %3932 }
0x10dd   :  { %v3209_v32 = vsel %vm3202_vm7, %v3933_v35, 0.0 }
0x10de   :  { %3210 = vadd.xlane.f32.xlu0 %v3209_v32 }
0x10df   :  { %4028 = shalt.err (!%p4025_p5)
}
0x10e0   :  { %s4076_s15 = smov 32   ;;  %s4077_s16 = smov 2  }
0x10e1   :  { %3236 = dma.vmem_to_hbm [thread:$0]  %s3231_s13, 64, %s4816_s5, [#allocation10], %s4076_s15, %s4076_s15, %s4077_s16  }
0x10e2   :  { %s4078_s19 = smov [#allocation8]  }
0x10e3   :  { %s3221_s20 = sshll.u32 %s4078_s19, 4  ;;  %s3222_s20 = int_to_ptr.vmem [resolvable:$true] %s3221_s20 }
0x10e4   :  { %s4037_s21 = scalar_lea.vmem %s3222_s20, 32  ;;  %p4042_p7 = scmp.lt.s32.totalorder %s3222_s20, %s3222_s20 }
0x10e5   :  { %p4038_p6 = scmp.ne.s32.totalorder %s3222_s20, %s4037_s21  ;;  %p4043_p8 = scmp.lt.s32.totalorder %s4037_s21, %s4037_s21 }
0x10e7   :  { %p4044_p9 = por %p4043_p8, %p4042_p7 }
0x10e9   :  { %p4045_p10 = pnand %p4044_p9, %p4038_p6 }
0x1167   :  { %v3211_v17 = vpop.xlane.xlu0 %3210 }
0x1168   :  { %3934 = vrcp.f32 %v3211_v17 }
0x1175   :  { %v3935_v39 = vpop.eup %3934 }
0x1176   :  { %v3213_v59 = vmul.f32 %v3935_v39, %v3933_v35 }
0x1178   :  { %3214 = vst.msk [vmem:[#allocation8] sm:$0x3] %vm3202_vm7, %v3213_v59 }
0x1179   :  { %4048 = shalt.err (!%p4045_p10)
}
0x117a   :  { %3224 = dma.vmem_to_hbm [thread:$0]  %s3222_s20, 32, %s4815_s4, [#allocation4]  }
0x117b   :  { %4061 = dma.done.wait [#allocation4], 32  }
0x117c   :  { %4062 = vsyncadd [#allocation4], 4294967264 }
0x117d   :  { %4063 = dma.done.wait [#allocation10], 64  }
0x117e   :  { %4064 = vsyncadd [#allocation10], 4294967232 }
0x117f   :  { %3243 = vsyncpa [#allocation3], 1 }
0x1180   :  { %3244 = vsyncpa [#allocation6], 1 }
0x1181   :  { %3245 = vsyncpa [#allocation4], 1 }
0x1182   :  { %3246 = vsyncpa [#allocation10], 1 }

</bundles_post_ra>
